<compile_context>
chip_gen: v7x
topology: tpu7x:2x2x1
jax: 0.10.0
libtpu: 0.0.40
codegen_flags: <defaults>
</compile_context>

<pallas_src>
import functools

import numpy as np
import jax
import jax.numpy as jnp
from jax import lax
from jax.experimental import pallas as pl
from jax.experimental.pallas import tpu as pltpu

LANE = 128


# ------------------------------ small helpers -------------------------------

def _round_up(x, m):
    return (x + m - 1) // m * m


def _cdiv(a, b):
    return (a + b - 1) // b


def _vmem_capacity_bytes():
    try:
        cap = int(pltpu.get_tpu_info().vmem_capacity_bytes)
        if cap > 0:
            return cap
    except Exception:
        pass
    return 64 * 1024 * 1024          # conservative default (v7x per-core VMEM)


_VMEM_CAP = _vmem_capacity_bytes()
# Scoped VMEM requested from Mosaic, and the fraction the tiling plan may use.
_VMEM_LIMIT = int(min(max(_VMEM_CAP - 16 * 1024 * 1024, 32 * 1024 * 1024),
                      96 * 1024 * 1024))
_TILE_BUDGET = int(_VMEM_LIMIT * 0.6)


# ----------------------------- Pallas kernels ------------------------------

def _mm_bias_kernel(x_ref, w_ref, b_ref, o_ref, *, relu):
    y = jnp.dot(x_ref[...], w_ref[...], preferred_element_type=jnp.float32)
    y = y + b_ref[...]
    if relu:
        y = jnp.maximum(y, 0.0)
    o_ref[...] = y.astype(o_ref.dtype)


def _mm_bias_res_kernel(x_ref, w_ref, r_ref, b_ref, o_ref, *, relu):
    y = jnp.dot(x_ref[...], w_ref[...], preferred_element_type=jnp.float32)
    y = y + b_ref[...] + r_ref[...].astype(jnp.float32)
    if relu:
        y = jnp.maximum(y, 0.0)
    o_ref[...] = y.astype(o_ref.dtype)


def _mm2_bias_kernel(x_ref, w_ref, x2_ref, w2_ref, b_ref, o_ref, *, relu):
    # conv3 1x1 and the projection-shortcut 1x1 fused in one body.
    y = jnp.dot(x_ref[...], w_ref[...], preferred_element_type=jnp.float32)
    y = y + jnp.dot(x2_ref[...], w2_ref[...], preferred_element_type=jnp.float32)
    y = y + b_ref[...]
    if relu:
        y = jnp.maximum(y, 0.0)
    o_ref[...] = y.astype(o_ref.dtype)


def _conv3x3_taps_kernel(xph_ref, w_ref, b_ref, o_ref, *, stride, th, Wo):
    """One (batch, output-row-tile) step of a 3x3/pad-1 conv + bias + ReLU.

    xph_ref: (1, stride*stride, Hph, Wph, Cin) phase-decomposed padded plane of
    one batch image (resident in VMEM across the inner row-tile grid axis);
    every tap is a contiguous slice of one phase plane -> no im2col.
    o_ref: (1, th*Wo, Cout) output row tile.  The f32 accumulator is only
    (th*Wo, Cout) so it stays in vregs, and it is seeded by the first tap's dot.
    """
    cin = xph_ref.shape[-1]
    r0 = pl.multiple_of(pl.program_id(1) * th, th)
    acc = None
    for kh in range(3):
        for kw in range(3):
            p = (kh % stride) * stride + (kw % stride)
            oh, ow = kh // stride, kw // stride
            tap = xph_ref[0, p, pl.ds(r0 + oh, th), ow:ow + Wo, :]   # (th, Wo, Cin)
            part = jnp.dot(tap.reshape(th * Wo, cin), w_ref[kh * 3 + kw],
                           preferred_element_type=jnp.float32)
            acc = part if acc is None else acc + part
    y = jnp.maximum(acc + b_ref[...], 0.0)
    o_ref[0] = y.astype(o_ref.dtype)


# ------------------------------ tiling helpers ------------------------------

def _pick_row_tiling(m, bytes_per_row, resident_bytes, n_col_tiles,
                     budget=_TILE_BUDGET, min_steps=8):
    """Largest row tile whose tiles + resident weights + accumulators fit,
    then shrunk so the grid keeps enough steps for pipelining / megacore."""
    tm = 128
    for cand in (1024, 512, 256, 128):      # tm capped at 1024 (v7x VMEM honest)
        if resident_bytes + cand * bytes_per_row <= budget:
            tm = cand
            break
    while tm > 128 and _cdiv(m, tm) * n_col_tiles < min_steps:
        tm //= 2
    if m <= tm:
        mp = _round_up(m, 8)
        return mp, mp                       # single full-extent row block
    return _round_up(m, tm), tm


def _pick_conv_row_tile(Ho, Wo, C):
    """Output-row tile so the f32 accumulator (rows*Wo, C) is <= ~128 KiB and
    (th*Wo) stays sublane-aligned; th divides Ho so no output padding."""
    target_rows = max(8, 32768 // max(C, 1))       # rows*C*4 ~ 128 KiB
    cap = max(1, min(Ho, target_rows // max(Wo, 1)))
    for th in range(cap, 0, -1):
        if Ho % th == 0 and (th * Wo) % 8 == 0:
            return th
    return Ho                                      # single tile (full extent)


# --------------------------- fused matmul wrapper ----------------------------

def fused_matmul_bias(x, w, bias, *, relu, residual=None, x2=None, w2=None,
                      out_dtype=jnp.bfloat16):
    """maybe_relu(x @ w [+ x2 @ w2] [+ residual] + bias), row/col tiled.

    x:(M,K) bf16, w:(K,N) bf16 (BN scale pre-folded), bias:(N,) f32,
    residual:(M,N) or None, x2:(M,K2)/w2:(K2,N) optional fused second matmul
    (projection shortcut).  K, K2, N must be multiples of 128 (lane-dense).
    """
    assert not (residual is not None and x2 is not None)
    M, K = x.shape
    N = w.shape[1]
    if N <= 512:
        tn = N
    elif N % 512 == 0:
        tn = 512
    elif N % 256 == 0:
        tn = 256
    else:
        tn = 128

    out_bytes = np.dtype(out_dtype).itemsize
    K2 = x2.shape[1] if x2 is not None else 0
    # Streamed bytes per output row (double-buffered) + f32 dot accumulator(s).
    stream_row = (K * 2 + K2 * 2 + tn * out_bytes
                  + (tn * 2 if residual is not None else 0))
    acc_row = tn * 4 * (2 if x2 is not None else 1)
    bytes_per_row = 2 * stream_row + acc_row
    # Resident (per column tile) weight blocks, double-buffered, + bias.
    resident = 2 * (K + K2) * tn * 2 + 2 * tn * 4
    Mp, tm = _pick_row_tiling(M, bytes_per_row, resident, N // tn)
    # TODO(synk): add a K-reduction grid axis (f32 acc scratch) when the K*N
    # weight blocks alone exceed the VMEM budget (very wide layers on v7x).

    n_row, n_col = Mp // tm, N // tn
    # Loop-order choice: keep whichever operand would be re-fetched more often
    # resident across the inner grid axis (weights vs activation rows).
    w_total = (K + K2) * N * 2
    x_total = Mp * (K + K2) * 2
    m_inner = (n_col * x_total) < (n_row * w_total)
    if m_inner:
        grid = (n_col, n_row)
        x_map = lambda j, i: (i, 0)
        w_map = lambda j, i: (0, j)
        rc_map = lambda j, i: (i, j)
        b_map = lambda j, i: (0, j)
    else:
        grid = (n_row, n_col)
        x_map = lambda i, j: (i, 0)
        w_map = lambda i, j: (0, j)
        rc_map = lambda i, j: (i, j)
        b_map = lambda i, j: (0, j)

    def pad_rows(a):
        return a if a.shape[0] == Mp else jnp.pad(a, ((0, Mp - a.shape[0]), (0, 0)))

    args = [pad_rows(x), w]
    in_specs = [pl.BlockSpec((tm, K), x_map),
                pl.BlockSpec((K, tn), w_map)]
    if x2 is not None:
        args += [pad_rows(x2), w2]
        in_specs += [pl.BlockSpec((tm, K2), x_map),
                     pl.BlockSpec((K2, tn), w_map)]
        kernel = functools.partial(_mm2_bias_kernel, relu=relu)
    elif residual is not None:
        args.append(pad_rows(residual))
        in_specs.append(pl.BlockSpec((tm, tn), rc_map))
        kernel = functools.partial(_mm_bias_res_kernel, relu=relu)
    else:
        kernel = functools.partial(_mm_bias_kernel, relu=relu)
    args.append(bias.reshape(1, N).astype(jnp.float32))
    in_specs.append(pl.BlockSpec((1, tn), b_map))

    out = pl.pallas_call(
        kernel,
        out_shape=jax.ShapeDtypeStruct((Mp, N), out_dtype),
        grid=grid,
        in_specs=in_specs,
        out_specs=pl.BlockSpec((tm, tn), rc_map),
        compiler_params=pltpu.CompilerParams(
            dimension_semantics=("parallel", "parallel"),
            vmem_limit_bytes=_VMEM_LIMIT),
    )(*args)
    return out[:M] if Mp != M else out


# ------------------------------ 3x3 conv wrapper -----------------------------

def conv3x3_bn_relu(x_nhwc, w_taps, bias, stride):
    """3x3/pad-1/stride conv + folded-BN bias + ReLU, taps accumulated in-kernel.

    x_nhwc: (B, H, W, C) bf16 (C lane-padded); w_taps: (9, C, C) bf16 with the
    BN scale folded in (tap-major, [in, out]); bias: (C,) f32.
    Returns (B, Ho*Wo, C) bf16.
    """
    B, H, W, C = x_nhwc.shape
    s = stride
    Ho = (H - 1) // s + 1
    Wo = (W - 1) // s + 1
    Hp = _round_up(H + 2, s)
    Wp = _round_up(W + 2, s)
    # TODO(synk): fold the 1-px halo pad / phase transpose into the kernel via
    # an in-kernel halo DMA (pl.run_scoped + make_async_copy) to avoid this
    # extra XLA HBM pass over the mid activation.
    xp = jnp.pad(x_nhwc, ((0, 0), (1, Hp - H - 1), (1, Wp - W - 1), (0, 0)))
    Hph, Wph = Hp // s, Wp // s
    if s == 1:
        phases = xp[:, None]                                    # (B, 1, Hp, Wp, C)
    else:
        phases = xp.reshape(B, Hph, s, Wph, s, C)
        phases = phases.transpose(0, 2, 4, 1, 3, 5).reshape(B, s * s, Hph, Wph, C)
    # TODO(synk): tile the phase plane itself if Hph*Wph*C ever outgrows VMEM;
    # not needed for ResNet-sized feature maps.

    th = _pick_conv_row_tile(Ho, Wo, C)
    R = Ho // th
    kernel = functools.partial(_conv3x3_taps_kernel, stride=s, th=th, Wo=Wo)
    return pl.pallas_call(
        kernel,
        out_shape=jax.ShapeDtypeStruct((B, Ho * Wo, C), jnp.bfloat16),
        grid=(B, R),
        in_specs=[
            pl.BlockSpec((1, s * s, Hph, Wph, C), lambda b, r: (b, 0, 0, 0, 0)),
            pl.BlockSpec((9, C, C), lambda b, r: (0, 0, 0)),
            pl.BlockSpec((1, C), lambda b, r: (0, 0)),
        ],
        out_specs=pl.BlockSpec((1, th * Wo, C), lambda b, r: (b, r, 0)),
        compiler_params=pltpu.CompilerParams(
            dimension_semantics=("parallel", "parallel"),
            vmem_limit_bytes=_VMEM_LIMIT),
    )(phases, w_taps, bias.reshape(1, C).astype(jnp.float32))


# ------------------------------- glue (JAX) ----------------------------------

def bn_fold(gamma, beta, mean, var, eps=1e-5):
    scale = gamma / jnp.sqrt(var + eps)
    bias = beta - mean * scale
    return scale, bias


def bottleneck_forward(x_nchw, params, stride, same_feature_map):
    B, Cin, H, W = x_nchw.shape
    Cmid = params["w1"].shape[1]
    Cout = params["w3"].shape[1]
    Cin_p, Cmid_p, Cout_p = (_round_up(c, LANE) for c in (Cin, Cmid, Cout))
    if same_feature_map:
        # nn.Module adds x directly; that is only shape-valid when stride == 1.
        assert stride == 1, "identity shortcut requires stride == 1"

    # Boundary layout ops in bf16 (half the bytes of the largest HBM passes).
    x = jnp.transpose(x_nchw.astype(jnp.bfloat16), (0, 2, 3, 1))  # NCHW -> NHWC
    x = jnp.pad(x, ((0, 0), (0, 0), (0, 0), (0, Cin_p - Cin)))

    # conv_1 (1x1) + BN1 + ReLU : fused matmul, BN scale folded into the weight.
    s1, b1 = bn_fold(*params["bn1"])
    w1 = jnp.pad(params["w1"] * s1[None, :],
                 ((0, Cin_p - Cin), (0, Cmid_p - Cmid))).astype(jnp.bfloat16)
    b1 = jnp.pad(b1, (0, Cmid_p - Cmid))
    y1 = fused_matmul_bias(x.reshape(B * H * W, Cin_p), w1, b1, relu=True)
    y1 = y1.reshape(B, H, W, Cmid_p)

    # conv_2 (3x3, stride) + BN2 + ReLU : in-kernel tap accumulation (no im2col).
    s2, b2 = bn_fold(*params["bn2"])
    w2 = params["w2"] * s2[None, None, None, :]
    w2 = jnp.pad(w2, ((0, 0), (0, 0), (0, Cmid_p - Cmid), (0, Cmid_p - Cmid)))
    w2 = w2.reshape(9, Cmid_p, Cmid_p).astype(jnp.bfloat16)
    b2 = jnp.pad(b2, (0, Cmid_p - Cmid))
    Ho = (H - 1) // stride + 1
    Wo = (W - 1) // stride + 1
    y2 = conv3x3_bn_relu(y1, w2, b2, stride).reshape(B * Ho * Wo, Cmid_p)

    # conv_3 (1x1) + BN3 + shortcut + ReLU, all fused in one kernel call.
    s3, b3 = bn_fold(*params["bn3"])
    w3 = jnp.pad(params["w3"] * s3[None, :],
                 ((0, Cmid_p - Cmid), (0, Cout_p - Cout))).astype(jnp.bfloat16)
    if same_feature_map:
        res = x.reshape(B * H * W, Cin_p)                        # Cin_p == Cout_p
        y3 = fused_matmul_bias(y2, w3, jnp.pad(b3, (0, Cout_p - Cout)),
                               relu=True, residual=res)
    else:
        sp, bp = bn_fold(*params["bnp"])
        wp = jnp.pad(params["wp"] * sp[None, :],
                     ((0, Cin_p - Cin), (0, Cout_p - Cout))).astype(jnp.bfloat16)
        xs = x[:, ::stride, ::stride, :].reshape(B * Ho * Wo, Cin_p)
        bias = jnp.pad(b3 + bp, (0, Cout_p - Cout))
        y3 = fused_matmul_bias(y2, w3, bias, relu=True, x2=xs, w2=wp)
    y3 = y3.reshape(B, Ho, Wo, Cout_p)[..., :Cout]               # drop lane padding
    # NHWC -> NCHW in bf16, widen to f32 only at the very end.
    return jnp.transpose(y3, (0, 3, 1, 2)).astype(jnp.float32)


# ------------------------------ parameter init -------------------------------

def init_bottleneck_params(key, in_ch, mid_ch, expansion):
    out_ch = expansion * mid_ch
    keys = jax.random.split(key, 8)

    def bn_params(k, c):
        k1, k2, k3, k4 = jax.random.split(k, 4)
        gamma = 1.0 + 0.1 * jax.random.normal(k1, (c,), jnp.float32)
        beta = 0.1 * jax.random.normal(k2, (c,), jnp.float32)
        mean = 0.1 * jax.random.normal(k3, (c,), jnp.float32)
        var = jnp.abs(jax.random.normal(k4, (c,), jnp.float32)) + 0.5
        return gamma, beta, mean, var

    p = {}
    p["w1"] = 0.1 * jax.random.normal(keys[0], (in_ch, mid_ch), jnp.float32)
    p["bn1"] = bn_params(keys[1], mid_ch)
    p["w2"] = 0.1 * jax.random.normal(keys[2], (3, 3, mid_ch, mid_ch), jnp.float32)
    p["bn2"] = bn_params(keys[3], mid_ch)
    p["w3"] = 0.1 * jax.random.normal(keys[4], (mid_ch, out_ch), jnp.float32)
    p["bn3"] = bn_params(keys[5], out_ch)
    if in_ch != out_ch:
        p["wp"] = 0.1 * jax.random.normal(keys[6], (in_ch, out_ch), jnp.float32)
        p["bnp"] = bn_params(keys[7], out_ch)
    return p


# --------------------------- pure-JAX f32 reference --------------------------

def reference_forward(x_nchw, params, stride, same_feature_map, eps=1e-5):
    def bn(x, g, b, m, v):
        g, b, m, v = (t[None, :, None, None] for t in (g, b, m, v))
        return (x - m) / jnp.sqrt(v + eps) * g + b

    def conv(x, w_oihw, s, pad):
        return lax.conv_general_dilated(
            x, w_oihw, (s, s), [(pad, pad), (pad, pad)],
            dimension_numbers=("NCHW", "OIHW", "NCHW"))

    w1 = jnp.transpose(params["w1"], (1, 0))[:, :, None, None]
    y = jax.nn.relu(bn(conv(x_nchw, w1, 1, 0), *params["bn1"]))
    w2 = jnp.transpose(params["w2"], (3, 2, 0, 1))
    y = jax.nn.relu(bn(conv(y, w2, stride, 1), *params["bn2"]))
    w3 = jnp.transpose(params["w3"], (1, 0))[:, :, None, None]
    y = bn(conv(y, w3, 1, 0), *params["bn3"])
    if same_feature_map:
        res = x_nchw
    else:
        wp = jnp.transpose(params["wp"], (1, 0))[:, :, None, None]
        res = bn(conv(x_nchw, wp, stride, 0), *params["bnp"])
    return jax.nn.relu(y + res)


# ----------------------------------- main ------------------------------------

if __name__ == "__main__":
    key = jax.random.PRNGKey(0)

    configs = [
        # (B, in_ch, mid_ch, expansion, stride, H, W)
        (2, 8, 8, 4, 2, 16, 16),    # projection shortcut, strided
        (2, 32, 8, 4, 1, 16, 16),   # identity shortcut
    ]
    for idx, (B, in_ch, mid_ch, expansion, stride, H, W) in enumerate(configs):
        k_x, k_p = jax.random.split(jax.random.fold_in(key, idx))
        out_ch = mid_ch * expansion
        same_feature_map = (in_ch == out_ch)
        x = jax.random.normal(k_x, (B, in_ch, H, W), jnp.float32)
        params = init_bottleneck_params(k_p, in_ch, mid_ch, expansion)

        fwd = jax.jit(functools.partial(bottleneck_forward, stride=stride,
                                        same_feature_map=same_feature_map))
        out = jax.block_until_ready(fwd(x, params))
        ref = reference_forward(x, params, stride, same_feature_map)

        Ho = (H - 1) // stride + 1
        Wo = (W - 1) // stride + 1
        assert out.shape == (B, out_ch, Ho, Wo), out.shape
        # bf16 MXU operands / activations vs. the pure-f32 reference.
        np.testing.assert_allclose(np.asarray(out), np.asarray(ref),
                                   rtol=5e-2, atol=5e-2)
    print("KERNEL_OK")
</pallas_src>

<mosaic_0001>
module attributes {stable_mosaic.version = 11 : i64} {
  func.func @_mm_bias_kernel(%arg0: i32, %arg1: i32, %arg2: memref<128x128xbf16, #tpu.memory_space<vmem>>, %arg3: memref<128x128xbf16, #tpu.memory_space<vmem>>, %arg4: memref<1x128xf32, #tpu.memory_space<vmem>>, %arg5: memref<128x128xbf16, #tpu.memory_space<vmem>>) attributes {dimension_semantics = [#tpu.dimension_semantics<parallel>, #tpu.dimension_semantics<parallel>], iteration_bounds = array<i64: 4, 1>, scalar_prefetch = 0 : i64, scratch_operands = 0 : i64, tpu.core_type = #tpu.core_type<tc>, window_params = [{transform_indices = @transform_0, window_bounds = array<i64: 128, 128>}, {transform_indices = @transform_1, window_bounds = array<i64: 128, 128>}, {transform_indices = @transform_2, window_bounds = array<i64: 1, 128>}, {transform_indices = @transform_3, window_bounds = array<i64: 128, 128>}]} {
    %c0 = arith.constant 0 : index
    %c0_0 = arith.constant 0 : index
    %0 = vector.load %arg2[%c0, %c0_0] : memref<128x128xbf16, #tpu.memory_space<vmem>>, vector<128x128xbf16>
    %c0_1 = arith.constant 0 : index
    %c0_2 = arith.constant 0 : index
    %1 = vector.load %arg3[%c0_1, %c0_2] : memref<128x128xbf16, #tpu.memory_space<vmem>>, vector<128x128xbf16>
    %cst = arith.constant dense<0.000000e+00> : vector<128x128xf32>
    %2 = tpu.matmul %0, %1, %cst {dimension_numbers = #tpu.dot_dimension_numbers<[1], [0], [0], [1], [0, 0, 1, 1], [], []>} : vector<128x128xbf16>, vector<128x128xbf16>, vector<128x128xf32> -> vector<128x128xf32>
    %c0_3 = arith.constant 0 : index
    %c0_4 = arith.constant 0 : index
    %3 = vector.load %arg4[%c0_3, %c0_4] : memref<1x128xf32, #tpu.memory_space<vmem>>, vector<1x128xf32>
    %4 = vector.broadcast %3 : vector<1x128xf32> to vector<128x128xf32>
    %5 = arith.addf %2, %4 : vector<128x128xf32>
    %cst_5 = arith.constant 0.000000e+00 : f32
    %6 = vector.broadcast %cst_5 : f32 to vector<128x128xf32>
    %7 = arith.maximumf %5, %6 : vector<128x128xf32>
    %8 = arith.truncf %7 : vector<128x128xf32> to vector<128x128xbf16>
    %c0_6 = arith.constant 0 : index
    %c0_7 = arith.constant 0 : index
    %9 = vector.load %arg5[%c0_6, %c0_7] : memref<128x128xbf16, #tpu.memory_space<vmem>>, vector<128x128xbf16>
    tpu.vector_store %arg5[%c0_6, %c0_7], %8 {strides = array<i32>} : memref<128x128xbf16, #tpu.memory_space<vmem>>, vector<128x128xbf16>,
    return
  }
  func.func @transform_0(%arg0: i32, %arg1: i32) -> (i32, i32) {
    %c0_i32 = arith.constant 0 : i32
    %c0_i32_0 = arith.constant 0 : i32
    return %arg0, %c0_i32 : i32, i32
  }
  func.func @transform_1(%arg0: i32, %arg1: i32) -> (i32, i32) {
    %c0_i32 = arith.constant 0 : i32
    %c0_i32_0 = arith.constant 0 : i32
    return %c0_i32, %arg1 : i32, i32
  }
  func.func @transform_2(%arg0: i32, %arg1: i32) -> (i32, i32) {
    %c0_i32 = arith.constant 0 : i32
    %c0_i32_0 = arith.constant 0 : i32
    return %c0_i32, %arg1 : i32, i32
  }
  func.func @transform_3(%arg0: i32, %arg1: i32) -> (i32, i32) {
    %c0_i32 = arith.constant 0 : i32
    return %arg0, %arg1 : i32, i32
  }
}

module attributes {stable_mosaic.version = 11 : i64} {
  func.func @_conv3x3_taps_kernel(%arg0: i32, %arg1: i32, %arg2: memref<1x4x9x9x128xbf16, #tpu.memory_space<vmem>>, %arg3: memref<9x128x128xbf16, #tpu.memory_space<vmem>>, %arg4: memref<1x128xf32, #tpu.memory_space<vmem>>, %arg5: memref<1x64x128xbf16, #tpu.memory_space<vmem>>) attributes {dimension_semantics = [#tpu.dimension_semantics<parallel>, #tpu.dimension_semantics<parallel>], iteration_bounds = array<i64: 2, 1>, scalar_prefetch = 0 : i64, scratch_operands = 0 : i64, tpu.core_type = #tpu.core_type<tc>, window_params = [{transform_indices = @transform_0, window_bounds = array<i64: 1, 4, 9, 9, 128>}, {pipeline_mode = #tpu.pipeline_mode<synchronous>, transform_indices = @transform_1, window_bounds = array<i64: 9, 128, 128>}, {pipeline_mode = #tpu.pipeline_mode<synchronous>, transform_indices = @transform_2, window_bounds = array<i64: 1, 128>}, {transform_indices = @transform_3, window_bounds = array<i64: 1, 64, 128>}]} {
    %c8_i32 = arith.constant 8 : i32
    %0 = arith.muli %arg1, %c8_i32 : i32
    %1 = tpu.assume_multiple %0, 8 : i32
    %c0_i32 = arith.constant 0 : i32
    %2 = arith.addi %1, %c0_i32 : i32
    %c0 = arith.constant 0 : index
    %c0_0 = arith.constant 0 : index
    %3 = arith.index_cast %2 : i32 to index
    %c0_1 = arith.constant 0 : index
    %c0_2 = arith.constant 0 : index
    %4 = vector.load %arg2[%c0, %c0_0, %3, %c0_1, %c0_2] : memref<1x4x9x9x128xbf16, #tpu.memory_space<vmem>>, vector<1x1x8x8x128xbf16>
    %5 = vector.shape_cast %4 : vector<1x1x8x8x128xbf16> to vector<8x8x128xbf16>
    %6 = vector.shape_cast %5 : vector<8x8x128xbf16> to vector<64x128xbf16>
    %c0_3 = arith.constant 0 : index
    %c0_4 = arith.constant 0 : index
    %c0_5 = arith.constant 0 : index
    %7 = vector.load %arg3[%c0_3, %c0_4, %c0_5] : memref<9x128x128xbf16, #tpu.memory_space<vmem>>, vector<1x128x128xbf16>
    %8 = vector.shape_cast %7 : vector<1x128x128xbf16> to vector<128x128xbf16>
    %cst = arith.constant dense<0.000000e+00> : vector<64x128xf32>
    %9 = tpu.matmul %6, %8, %cst {dimension_numbers = #tpu.dot_dimension_numbers<[1], [0], [0], [1], [0, 0, 1, 1], [], []>} : vector<64x128xbf16>, vector<128x128xbf16>, vector<64x128xf32> -> vector<64x128xf32>
    %c0_i32_6 = arith.constant 0 : i32
    %10 = arith.addi %1, %c0_i32_6 : i32
    %c0_7 = arith.constant 0 : index
    %c1 = arith.constant 1 : index
    %11 = arith.index_cast %10 : i32 to index
    %c0_8 = arith.constant 0 : index
    %c0_9 = arith.constant 0 : index
    %12 = vector.load %arg2[%c0_7, %c1, %11, %c0_8, %c0_9] : memref<1x4x9x9x128xbf16, #tpu.memory_space<vmem>>, vector<1x1x8x8x128xbf16>
    %13 = vector.shape_cast %12 : vector<1x1x8x8x128xbf16> to vector<8x8x128xbf16>
    %14 = vector.shape_cast %13 : vector<8x8x128xbf16> to vector<64x128xbf16>
    %c1_10 = arith.constant 1 : index
    %c0_11 = arith.constant 0 : index
    %c0_12 = arith.constant 0 : index
    %15 = vector.load %arg3[%c1_10, %c0_11, %c0_12] : memref<9x128x128xbf16, #tpu.memory_space<vmem>>, vector<1x128x128xbf16>
    %16 = vector.shape_cast %15 : vector<1x128x128xbf16> to vector<128x128xbf16>
    %cst_13 = arith.constant dense<0.000000e+00> : vector<64x128xf32>
    %17 = tpu.matmul %14, %16, %cst_13 {dimension_numbers = #tpu.dot_dimension_numbers<[1], [0], [0], [1], [0, 0, 1, 1], [], []>} : vector<64x128xbf16>, vector<128x128xbf16>, vector<64x128xf32> -> vector<64x128xf32>
    %18 = arith.addf %9, %17 : vector<64x128xf32>
    %c0_i32_14 = arith.constant 0 : i32
    %19 = arith.addi %1, %c0_i32_14 : i32
    %c0_15 = arith.constant 0 : index
    %c0_16 = arith.constant 0 : index
    %20 = arith.index_cast %19 : i32 to index
    %c1_17 = arith.constant 1 : index
    %c0_18 = arith.constant 0 : index
    %21 = vector.load %arg2[%c0_15, %c0_16, %20, %c1_17, %c0_18] : memref<1x4x9x9x128xbf16, #tpu.memory_space<vmem>>, vector<1x1x8x8x128xbf16>
    %22 = vector.shape_cast %21 : vector<1x1x8x8x128xbf16> to vector<8x8x128xbf16>
    %23 = vector.shape_cast %22 : vector<8x8x128xbf16> to vector<64x128xbf16>
    %c2 = arith.constant 2 : index
    %c0_19 = arith.constant 0 : index
    %c0_20 = arith.constant 0 : index
    %24 = vector.load %arg3[%c2, %c0_19, %c0_20] : memref<9x128x128xbf16, #tpu.memory_space<vmem>>, vector<1x128x128xbf16>
    %25 = vector.shape_cast %24 : vector<1x128x128xbf16> to vector<128x128xbf16>
    %cst_21 = arith.constant dense<0.000000e+00> : vector<64x128xf32>
    %26 = tpu.matmul %23, %25, %cst_21 {dimension_numbers = #tpu.dot_dimension_numbers<[1], [0], [0], [1], [0, 0, 1, 1], [], []>} : vector<64x128xbf16>, vector<128x128xbf16>, vector<64x128xf32> -> vector<64x128xf32>
    %27 = arith.addf %18, %26 : vector<64x128xf32>
    %c0_i32_22 = arith.constant 0 : i32
    %28 = arith.addi %1, %c0_i32_22 : i32
    %c0_23 = arith.constant 0 : index
    %c2_24 = arith.constant 2 : index
    %29 = arith.index_cast %28 : i32 to index
    %c0_25 = arith.constant 0 : index
    %c0_26 = arith.constant 0 : index
    %30 = vector.load %arg2[%c0_23, %c2_24, %29, %c0_25, %c0_26] : memref<1x4x9x9x128xbf16, #tpu.memory_space<vmem>>, vector<1x1x8x8x128xbf16>
    %31 = vector.shape_cast %30 : vector<1x1x8x8x128xbf16> to vector<8x8x128xbf16>
    %32 = vector.shape_cast %31 : vector<8x8x128xbf16> to vector<64x128xbf16>
    %c3 = arith.constant 3 : index
    %c0_27 = arith.constant 0 : index
    %c0_28 = arith.constant 0 : index
    %33 = vector.load %arg3[%c3, %c0_27, %c0_28] : memref<9x128x128xbf16, #tpu.memory_space<vmem>>, vector<1x128x128xbf16>
    %34 = vector.shape_cast %33 : vector<1x128x128xbf16> to vector<128x128xbf16>
    %cst_29 = arith.constant dense<0.000000e+00> : vector<64x128xf32>
    %35 = tpu.matmul %32, %34, %cst_29 {dimension_numbers = #tpu.dot_dimension_numbers<[1], [0], [0], [1], [0, 0, 1, 1], [], []>} : vector<64x128xbf16>, vector<128x128xbf16>, vector<64x128xf32> -> vector<64x128xf32>
    %36 = arith.addf %27, %35 : vector<64x128xf32>
    %c0_i32_30 = arith.constant 0 : i32
    %37 = arith.addi %1, %c0_i32_30 : i32
    %c0_31 = arith.constant 0 : index
    %c3_32 = arith.constant 3 : index
    %38 = arith.index_cast %37 : i32 to index
    %c0_33 = arith.constant 0 : index
    %c0_34 = arith.constant 0 : index
    %39 = vector.load %arg2[%c0_31, %c3_32, %38, %c0_33, %c0_34] : memref<1x4x9x9x128xbf16, #tpu.memory_space<vmem>>, vector<1x1x8x8x128xbf16>
    %40 = vector.shape_cast %39 : vector<1x1x8x8x128xbf16> to vector<8x8x128xbf16>
    %41 = vector.shape_cast %40 : vector<8x8x128xbf16> to vector<64x128xbf16>
    %c4 = arith.constant 4 : index
    %c0_35 = arith.constant 0 : index
    %c0_36 = arith.constant 0 : index
    %42 = vector.load %arg3[%c4, %c0_35, %c0_36] : memref<9x128x128xbf16, #tpu.memory_space<vmem>>, vector<1x128x128xbf16>
    %43 = vector.shape_cast %42 : vector<1x128x128xbf16> to vector<128x128xbf16>
    %cst_37 = arith.constant dense<0.000000e+00> : vector<64x128xf32>
    %44 = tpu.matmul %41, %43, %cst_37 {dimension_numbers = #tpu.dot_dimension_numbers<[1], [0], [0], [1], [0, 0, 1, 1], [], []>} : vector<64x128xbf16>, vector<128x128xbf16>, vector<64x128xf32> -> vector<64x128xf32>
    %45 = arith.addf %36, %44 : vector<64x128xf32>
    %c0_i32_38 = arith.constant 0 : i32
    %46 = arith.addi %1, %c0_i32_38 : i32
    %c0_39 = arith.constant 0 : index
    %c2_40 = arith.constant 2 : index
    %47 = arith.index_cast %46 : i32 to index
    %c1_41 = arith.constant 1 : index
    %c0_42 = arith.constant 0 : index
    %48 = vector.load %arg2[%c0_39, %c2_40, %47, %c1_41, %c0_42] : memref<1x4x9x9x128xbf16, #tpu.memory_space<vmem>>, vector<1x1x8x8x128xbf16>
    %49 = vector.shape_cast %48 : vector<1x1x8x8x128xbf16> to vector<8x8x128xbf16>
    %50 = vector.shape_cast %49 : vector<8x8x128xbf16> to vector<64x128xbf16>
    %c5 = arith.constant 5 : index
    %c0_43 = arith.constant 0 : index
    %c0_44 = arith.constant 0 : index
    %51 = vector.load %arg3[%c5, %c0_43, %c0_44] : memref<9x128x128xbf16, #tpu.memory_space<vmem>>, vector<1x128x128xbf16>
    %52 = vector.shape_cast %51 : vector<1x128x128xbf16> to vector<128x128xbf16>
    %cst_45 = arith.constant dense<0.000000e+00> : vector<64x128xf32>
    %53 = tpu.matmul %50, %52, %cst_45 {dimension_numbers = #tpu.dot_dimension_numbers<[1], [0], [0], [1], [0, 0, 1, 1], [], []>} : vector<64x128xbf16>, vector<128x128xbf16>, vector<64x128xf32> -> vector<64x128xf32>
    %54 = arith.addf %45, %53 : vector<64x128xf32>
    %c1_i32 = arith.constant 1 : i32
    %55 = arith.addi %1, %c1_i32 : i32
    %c0_46 = arith.constant 0 : index
    %c0_47 = arith.constant 0 : index
    %56 = arith.index_cast %55 : i32 to index
    %c0_48 = arith.constant 0 : index
    %c0_49 = arith.constant 0 : index
    %57 = vector.load %arg2[%c0_46, %c0_47, %56, %c0_48, %c0_49] : memref<1x4x9x9x128xbf16, #tpu.memory_space<vmem>>, vector<1x1x8x8x128xbf16>
    %58 = vector.shape_cast %57 : vector<1x1x8x8x128xbf16> to vector<8x8x128xbf16>
    %59 = vector.shape_cast %58 : vector<8x8x128xbf16> to vector<64x128xbf16>
    %c6 = arith.constant 6 : index
    %c0_50 = arith.constant 0 : index
    %c0_51 = arith.constant 0 : index
    %60 = vector.load %arg3[%c6, %c0_50, %c0_51] : memref<9x128x128xbf16, #tpu.memory_space<vmem>>, vector<1x128x128xbf16>
    %61 = vector.shape_cast %60 : vector<1x128x128xbf16> to vector<128x128xbf16>
    %cst_52 = arith.constant dense<0.000000e+00> : vector<64x128xf32>
    %62 = tpu.matmul %59, %61, %cst_52 {dimension_numbers = #tpu.dot_dimension_numbers<[1], [0], [0], [1], [0, 0, 1, 1], [], []>} : vector<64x128xbf16>, vector<128x128xbf16>, vector<64x128xf32> -> vector<64x128xf32>
    %63 = arith.addf %54, %62 : vector<64x128xf32>
    %c1_i32_53 = arith.constant 1 : i32
    %64 = arith.addi %1, %c1_i32_53 : i32
    %c0_54 = arith.constant 0 : index
    %c1_55 = arith.constant 1 : index
    %65 = arith.index_cast %64 : i32 to index
    %c0_56 = arith.constant 0 : index
    %c0_57 = arith.constant 0 : index
    %66 = vector.load %arg2[%c0_54, %c1_55, %65, %c0_56, %c0_57] : memref<1x4x9x9x128xbf16, #tpu.memory_space<vmem>>, vector<1x1x8x8x128xbf16>
    %67 = vector.shape_cast %66 : vector<1x1x8x8x128xbf16> to vector<8x8x128xbf16>
    %68 = vector.shape_cast %67 : vector<8x8x128xbf16> to vector<64x128xbf16>
    %c7 = arith.constant 7 : index
    %c0_58 = arith.constant 0 : index
    %c0_59 = arith.constant 0 : index
    %69 = vector.load %arg3[%c7, %c0_58, %c0_59] : memref<9x128x128xbf16, #tpu.memory_space<vmem>>, vector<1x128x128xbf16>
    %70 = vector.shape_cast %69 : vector<1x128x128xbf16> to vector<128x128xbf16>
    %cst_60 = arith.constant dense<0.000000e+00> : vector<64x128xf32>
    %71 = tpu.matmul %68, %70, %cst_60 {dimension_numbers = #tpu.dot_dimension_numbers<[1], [0], [0], [1], [0, 0, 1, 1], [], []>} : vector<64x128xbf16>, vector<128x128xbf16>, vector<64x128xf32> -> vector<64x128xf32>
    %72 = arith.addf %63, %71 : vector<64x128xf32>
    %c1_i32_61 = arith.constant 1 : i32
    %73 = arith.addi %1, %c1_i32_61 : i32
    %c0_62 = arith.constant 0 : index
    %c0_63 = arith.constant 0 : index
    %74 = arith.index_cast %73 : i32 to index
    %c1_64 = arith.constant 1 : index
    %c0_65 = arith.constant 0 : index
    %75 = vector.load %arg2[%c0_62, %c0_63, %74, %c1_64, %c0_65] : memref<1x4x9x9x128xbf16, #tpu.memory_space<vmem>>, vector<1x1x8x8x128xbf16>
    %76 = vector.shape_cast %75 : vector<1x1x8x8x128xbf16> to vector<8x8x128xbf16>
    %77 = vector.shape_cast %76 : vector<8x8x128xbf16> to vector<64x128xbf16>
    %c8 = arith.constant 8 : index
    %c0_66 = arith.constant 0 : index
    %c0_67 = arith.constant 0 : index
    %78 = vector.load %arg3[%c8, %c0_66, %c0_67] : memref<9x128x128xbf16, #tpu.memory_space<vmem>>, vector<1x128x128xbf16>
    %79 = vector.shape_cast %78 : vector<1x128x128xbf16> to vector<128x128xbf16>
    %cst_68 = arith.constant dense<0.000000e+00> : vector<64x128xf32>
    %80 = tpu.matmul %77, %79, %cst_68 {dimension_numbers = #tpu.dot_dimension_numbers<[1], [0], [0], [1], [0, 0, 1, 1], [], []>} : vector<64x128xbf16>, vector<128x128xbf16>, vector<64x128xf32> -> vector<64x128xf32>
    %81 = arith.addf %72, %80 : vector<64x128xf32>
    %c0_69 = arith.constant 0 : index
    %c0_70 = arith.constant 0 : index
    %82 = vector.load %arg4[%c0_69, %c0_70] : memref<1x128xf32, #tpu.memory_space<vmem>>, vector<1x128xf32>
    %83 = vector.broadcast %82 : vector<1x128xf32> to vector<64x128xf32>
    %84 = arith.addf %81, %83 : vector<64x128xf32>
    %cst_71 = arith.constant 0.000000e+00 : f32
    %85 = vector.broadcast %cst_71 : f32 to vector<64x128xf32>
    %86 = arith.maximumf %84, %85 : vector<64x128xf32>
    %87 = arith.truncf %86 : vector<64x128xf32> to vector<64x128xbf16>
    %c0_72 = arith.constant 0 : index
    %c0_73 = arith.constant 0 : index
    %c0_74 = arith.constant 0 : index
    %88 = vector.load %arg5[%c0_72, %c0_73, %c0_74] : memref<1x64x128xbf16, #tpu.memory_space<vmem>>, vector<1x64x128xbf16>
    %89 = vector.shape_cast %88 : vector<1x64x128xbf16> to vector<64x128xbf16>
    %90 = vector.shape_cast %87 : vector<64x128xbf16> to vector<1x64x128xbf16>
    tpu.vector_store %arg5[%c0_72, %c0_73, %c0_74], %90 {strides = array<i32>} : memref<1x64x128xbf16, #tpu.memory_space<vmem>>, vector<1x64x128xbf16>,
    return
  }
  func.func @transform_0(%arg0: i32, %arg1: i32) -> (i32, i32, i32, i32, i32) {
    %c0_i32 = arith.constant 0 : i32
    %c0_i32_0 = arith.constant 0 : i32
    %c0_i32_1 = arith.constant 0 : i32
    %c0_i32_2 = arith.constant 0 : i32
    %c0_i32_3 = arith.constant 0 : i32
    return %arg0, %c0_i32, %c0_i32_0, %c0_i32_1, %c0_i32_2 : i32, i32, i32, i32, i32
  }
  func.func @transform_1(%arg0: i32, %arg1: i32) -> (i32, i32, i32) {
    %c0_i32 = arith.constant 0 : i32
    %c0_i32_0 = arith.constant 0 : i32
    %c0_i32_1 = arith.constant 0 : i32
    %c0_i32_2 = arith.constant 0 : i32
    return %c0_i32, %c0_i32_0, %c0_i32_1 : i32, i32, i32
  }
  func.func @transform_2(%arg0: i32, %arg1: i32) -> (i32, i32) {
    %c0_i32 = arith.constant 0 : i32
    %c0_i32_0 = arith.constant 0 : i32
    %c0_i32_1 = arith.constant 0 : i32
    return %c0_i32, %c0_i32_0 : i32, i32
  }
  func.func @transform_3(%arg0: i32, %arg1: i32) -> (i32, i32, i32) {
    %c0_i32 = arith.constant 0 : i32
    %c0_i32_0 = arith.constant 0 : i32
    return %arg0, %arg1, %c0_i32 : i32, i32, i32
  }
}

module attributes {stable_mosaic.version = 11 : i64} {
  func.func @_mm2_bias_kernel(%arg0: i32, %arg1: i32, %arg2: memref<128x128xbf16, #tpu.memory_space<vmem>>, %arg3: memref<128x128xbf16, #tpu.memory_space<vmem>>, %arg4: memref<128x128xbf16, #tpu.memory_space<vmem>>, %arg5: memref<128x128xbf16, #tpu.memory_space<vmem>>, %arg6: memref<1x128xf32, #tpu.memory_space<vmem>>, %arg7: memref<128x128xbf16, #tpu.memory_space<vmem>>) attributes {dimension_semantics = [#tpu.dimension_semantics<parallel>, #tpu.dimension_semantics<parallel>], iteration_bounds = array<i64: 1, 1>, scalar_prefetch = 0 : i64, scratch_operands = 0 : i64, tpu.core_type = #tpu.core_type<tc>, window_params = [{transform_indices = @transform_0, window_bounds = array<i64: 128, 128>}, {transform_indices = @transform_1, window_bounds = array<i64: 128, 128>}, {transform_indices = @transform_2, window_bounds = array<i64: 128, 128>}, {transform_indices = @transform_3, window_bounds = array<i64: 128, 128>}, {transform_indices = @transform_4, window_bounds = array<i64: 1, 128>}, {transform_indices = @transform_5, window_bounds = array<i64: 128, 128>}]} {
    %c0 = arith.constant 0 : index
    %c0_0 = arith.constant 0 : index
    %0 = vector.load %arg2[%c0, %c0_0] : memref<128x128xbf16, #tpu.memory_space<vmem>>, vector<128x128xbf16>
    %c0_1 = arith.constant 0 : index
    %c0_2 = arith.constant 0 : index
    %1 = vector.load %arg3[%c0_1, %c0_2] : memref<128x128xbf16, #tpu.memory_space<vmem>>, vector<128x128xbf16>
    %cst = arith.constant dense<0.000000e+00> : vector<128x128xf32>
    %2 = tpu.matmul %0, %1, %cst {dimension_numbers = #tpu.dot_dimension_numbers<[1], [0], [0], [1], [0, 0, 1, 1], [], []>} : vector<128x128xbf16>, vector<128x128xbf16>, vector<128x128xf32> -> vector<128x128xf32>
    %c0_3 = arith.constant 0 : index
    %c0_4 = arith.constant 0 : index
    %3 = vector.load %arg4[%c0_3, %c0_4] : memref<128x128xbf16, #tpu.memory_space<vmem>>, vector<128x128xbf16>
    %c0_5 = arith.constant 0 : index
    %c0_6 = arith.constant 0 : index
    %4 = vector.load %arg5[%c0_5, %c0_6] : memref<128x128xbf16, #tpu.memory_space<vmem>>, vector<128x128xbf16>
    %cst_7 = arith.constant dense<0.000000e+00> : vector<128x128xf32>
    %5 = tpu.matmul %3, %4, %cst_7 {dimension_numbers = #tpu.dot_dimension_numbers<[1], [0], [0], [1], [0, 0, 1, 1], [], []>} : vector<128x128xbf16>, vector<128x128xbf16>, vector<128x128xf32> -> vector<128x128xf32>
    %6 = arith.addf %2, %5 : vector<128x128xf32>
    %c0_8 = arith.constant 0 : index
    %c0_9 = arith.constant 0 : index
    %7 = vector.load %arg6[%c0_8, %c0_9] : memref<1x128xf32, #tpu.memory_space<vmem>>, vector<1x128xf32>
    %8 = vector.broadcast %7 : vector<1x128xf32> to vector<128x128xf32>
    %9 = arith.addf %6, %8 : vector<128x128xf32>
    %cst_10 = arith.constant 0.000000e+00 : f32
    %10 = vector.broadcast %cst_10 : f32 to vector<128x128xf32>
    %11 = arith.maximumf %9, %10 : vector<128x128xf32>
    %12 = arith.truncf %11 : vector<128x128xf32> to vector<128x128xbf16>
    %c0_11 = arith.constant 0 : index
    %c0_12 = arith.constant 0 : index
    %13 = vector.load %arg7[%c0_11, %c0_12] : memref<128x128xbf16, #tpu.memory_space<vmem>>, vector<128x128xbf16>
    tpu.vector_store %arg7[%c0_11, %c0_12], %12 {strides = array<i32>} : memref<128x128xbf16, #tpu.memory_space<vmem>>, vector<128x128xbf16>,
    return
  }
  func.func @transform_0(%arg0: i32, %arg1: i32) -> (i32, i32) {
    %c0_i32 = arith.constant 0 : i32
    %c0_i32_0 = arith.constant 0 : i32
    return %arg0, %c0_i32 : i32, i32
  }
  func.func @transform_1(%arg0: i32, %arg1: i32) -> (i32, i32) {
    %c0_i32 = arith.constant 0 : i32
    %c0_i32_0 = arith.constant 0 : i32
    return %c0_i32, %arg1 : i32, i32
  }
  func.func @transform_2(%arg0: i32, %arg1: i32) -> (i32, i32) {
    %c0_i32 = arith.constant 0 : i32
    %c0_i32_0 = arith.constant 0 : i32
    return %arg0, %c0_i32 : i32, i32
  }
  func.func @transform_3(%arg0: i32, %arg1: i32) -> (i32, i32) {
    %c0_i32 = arith.constant 0 : i32
    %c0_i32_0 = arith.constant 0 : i32
    return %c0_i32, %arg1 : i32, i32
  }
  func.func @transform_4(%arg0: i32, %arg1: i32) -> (i32, i32) {
    %c0_i32 = arith.constant 0 : i32
    %c0_i32_0 = arith.constant 0 : i32
    return %c0_i32, %arg1 : i32, i32
  }
  func.func @transform_5(%arg0: i32, %arg1: i32) -> (i32, i32) {
    %c0_i32 = arith.constant 0 : i32
    return %arg0, %arg1 : i32, i32
  }
}

</mosaic_0001>

<bundles_post_ra>
// kernel: bottleneck_forward.3
= control target key start
LH: loop header
LB: loop body
LE: loop exit
PB: predicated region body
PF: predicated region fallthrough
CT: control target
= control target key end

     0   :  { %s913_s12 = smov 0   ;;  %s915_s13 = smov 0   ;;  %s1000_s0 = inlined_call_operand.vmem [shape: bf16[512,128], index: 0, kind: input, shape index: {}]   ;;  %s1001_s1 = inlined_call_operand.vmem [shape: bf16[128,128], index: 1, kind: input, shape index: {}]   ;;  %s1002_s2 = inlined_call_operand.vmem [shape: f32[1,128], index: 2, kind: input, shape index: {}]   ;;  %s1003_s3 = inlined_call_operand.vmem [shape: bf16[512,128], index: 3, kind: output, shape index: {}]  }
   0x1   :  { %s917_s14 = smov 0  }
   0x2 LB: > { %s25_s15 = sadd.s32 1, %s887_s13  ;;  %p662_p0 = scmp.ge.s32.totalorder %s891_s14, 1  ;;  %s891_s14 = sphi %s917_s14, %s13_s14   ;;  %s887_s13 = sphi %s915_s13, %s1005_s13   ;;  %s883_s12 = sphi %s913_s12, %s1004_s12  }
   0x3   : > { %p27_p1 = scmp.ge.s32.totalorder %s25_s15, 4  ;;  %p169_p2 = scmp.lt.s32.totalorder %s891_s14, 5 }
   0x5   : > { %s1007_s15 = smov (%p27_p1, %s25_s15), 0  ;;  %p170_p3 = pnand %p662_p0, %p169_p2 }
   0x6   : > { %v853_v0 = vld [vmem:[%s1001_s1] sm:$0xff] (!%p170_p3)   ;;  %s663_s18 = sshll.u32 (!%p170_p3), %s883_s12, 4  ;;  %v854_v1 = vld [vmem:[%s1001_s1 + $0x8] sm:$0xff] (!%p170_p3)   ;;  %v855_v2 = vld [vmem:[%s1001_s1 + $0x10] sm:$0xff] (!%p170_p3)  }
   0x7   : > { %173 = sbr.rel (%p170_p3) target bundleno = 269 (0x10d), region = 32  ;;  %p204_p4 = scmp.lt.s32.totalorder (!%p170_p3), %s663_s18, 63  ;;  %781 = vmatprep.subr.bf16.mxu0 (!%p170_p3), %v853_v0  ;;  %813 = vmatprep.subr.bf16.mxu1 (!%p170_p3), %v853_v0  ;;  %v856_v3 = vld [vmem:[%s1001_s1 + $0x18] sm:$0xff] (!%p170_p3)   ;;  %v857_v6 = vld [vmem:[%s1001_s1 + $0x20] sm:$0xff] (!%p170_p3)   ;;  %v858_v7 = vld [vmem:[%s1001_s1 + $0x28] sm:$0xff] (!%p170_p3)  }
   0x8   : > { %782 = vmatpush3.bf16.msra.mxu0 (!%p170_p3), %v853_v0  ;;  %821 = vmatpush3.bf16.msra.mxu1 (!%p170_p3), %v853_v0  ;;  %v859_v8 = vld [vmem:[%s1001_s1 + $0x30] sm:$0xff] (!%p170_p3)   ;;  %v860_v9 = vld [vmem:[%s1001_s1 + $0x38] sm:$0xff] (!%p170_p3)   ;;  %v667_v16 = vld [vmem:[%s1002_s2] ss:$0 sm:$0xff] (!%p170_p3) }
   0x9   : > { %783 = vmatprep.subr.bf16.mxu0 (!%p170_p3), %v854_v1  ;;  %814 = vmatprep.subr.bf16.mxu1 (!%p170_p3), %v854_v1 }
   0xc   : > { %784 = vmatpush3.bf16.msra.mxu0 (!%p170_p3), %v854_v1  ;;  %822 = vmatpush3.bf16.msra.mxu1 (!%p170_p3), %v854_v1 }
   0xd   : > { %785 = vmatprep.subr.bf16.mxu0 (!%p170_p3), %v855_v2  ;;  %815 = vmatprep.subr.bf16.mxu1 (!%p170_p3), %v855_v2 }
   0xe   : > { %s1009_s18 = smov (!%p204_p4, %s663_s18), 63 }
   0xf   : > { %s664_s23 = sshll.u32 %s1009_s18, 2 }
  0x10   : > { %s948_s26 = scalar_lea.vmem %s1000_s0, %s664_s23  ;;  %786 = vmatpush3.bf16.msra.mxu0 %v855_v2  ;;  %823 = vmatpush3.bf16.msra.mxu1 %v855_v2  ;;  %s981_s17 = scalar_lea.vmem %s1003_s3, %s664_s23 }
  0x11   : > { %v861_v4 = vld [vmem:[%s948_s26] sm:$0xff]   ;;  %787 = vmatprep.subr.bf16.mxu0 %v856_v3  ;;  %816 = vmatprep.subr.bf16.mxu1 %v856_v3  ;;  %v863_v10 = vld [vmem:[%s948_s26 + $0x8] sm:$0xff]   ;;  %v865_v12 = vld [vmem:[%s948_s26 + $0x10] sm:$0xff]  }
  0x12   : > { %v862_v5 = vld [vmem:[%s948_s26 + $0x20] sm:$0xff]   ;;  %797 = vmatprep.mubr.bf16.mxu0 %v861_v4  ;;  %v864_v11 = vld [vmem:[%s948_s26 + $0x28] sm:$0xff]   ;;  %v866_v13 = vld [vmem:[%s948_s26 + $0x30] sm:$0xff]  }
  0x13   : > { %805 = vmatprep.mubr.bf16.mxu1 %v862_v5  ;;  %v867_v14 = vld [vmem:[%s948_s26 + $0x18] sm:$0xff]  }
  0x14   : > { %788 = vmatpush3.bf16.msra.mxu0 %v856_v3  ;;  %824 = vmatpush3.bf16.msra.mxu1 %v856_v3  ;;  %v868_v15 = vld [vmem:[%s948_s26 + $0x38] sm:$0xff]  }
  0x15   : > { %789 = vmatprep.subr.bf16.mxu0 %v857_v6  ;;  %817 = vmatprep.subr.bf16.mxu1 %v857_v6 }
  0x18   : > { %790 = vmatpush3.bf16.msra.mxu0 %v857_v6  ;;  %825 = vmatpush3.bf16.msra.mxu1 %v857_v6 }
  0x19   : > { %791 = vmatprep.subr.bf16.mxu0 %v858_v7  ;;  %818 = vmatprep.subr.bf16.mxu1 %v858_v7 }
  0x1c   : > { %792 = vmatpush3.bf16.msra.mxu0 %v858_v7  ;;  %826 = vmatpush3.bf16.msra.mxu1 %v858_v7 }
  0x1d   : > { %793 = vmatprep.subr.bf16.mxu0 %v859_v8  ;;  %819 = vmatprep.subr.bf16.mxu1 %v859_v8 }
  0x20   : > { %794 = vmatpush3.bf16.msra.mxu0 %v859_v8  ;;  %827 = vmatpush3.bf16.msra.mxu1 %v859_v8 }
  0x21   : > { %795 = vmatprep.subr.bf16.mxu0 %v860_v9  ;;  %820 = vmatprep.subr.bf16.mxu1 %v860_v9 }
  0x24   : > { %796 = vmatpush3.bf16.msra.mxu0 %v860_v9  ;;  %828 = vmatpush3.bf16.msra.mxu1 %v860_v9 }
  0x27   : > { %798 = vmatmul.mubr.bf16.vlgmr.msra.gmra.mrb[0].mxu0 %v863_v10  ;;  %806 = vmatmul.mubr.bf16.vlgmr.msra.gmra.mrb[0].mxu1 %v864_v11 }
  0x28   : > { %801 = vmatprep.mubr.bf16.mxu0 %v865_v12  ;;  %809 = vmatprep.mubr.bf16.mxu1 %v866_v13 }
  0x2f   : > { %802 = vmatmul.mubr.bf16.gmra.mrb[4].mxu0 %v867_v14  ;;  %810 = vmatmul.mubr.bf16.gmra.mrb[4].mxu1 %v868_v15 }
  0xfa   : > { %v799_v17 = vpop.f32.mrb[0].mxu0  ;;  %v807_v18 = vpop.f32.mrb[0].mxu1 }
  0xfb   : > { %v404_v19 = vadd.f32 %v799_v17, %v667_v16  ;;  %v436_v20 = vadd.f32 %v807_v18, %v667_v16  ;;  %v395_v21 = vpop.f32.mrb[1].mxu0  ;;  %v427_v22 = vpop.f32.mrb[1].mxu1 }
  0xfc   : > { %v396_v23 = vadd.f32 %v667_v16, %v395_v21  ;;  %v428_v24 = vadd.f32 %v667_v16, %v427_v22  ;;  %v800_v25 = vpop.f32.mrb[2].mxu0  ;;  %v808_v26 = vpop.f32.mrb[2].mxu1 }
  0xfd   : > { %v407_v27 = vadd.f32 %v800_v25, %v667_v16  ;;  %v439_v28 = vadd.f32 %v808_v26, %v667_v16  ;;  %v398_v29 = vpop.f32.mrb[3].mxu0  ;;  %v430_v30 = vpop.f32.mrb[3].mxu1  ;;  %v460_v33 = vmax.f32 %v404_v19, 0.0  ;;  %v468_v34 = vmax.f32 %v436_v20, 0.0 }
  0xfe   : > { %v399_v31 = vadd.f32 %v667_v16, %v398_v29  ;;  %v431_v32 = vadd.f32 %v667_v16, %v430_v30  ;;  %v458_v37 = vmax.f32 %v396_v23, 0.0  ;;  %v466_v38 = vmax.f32 %v428_v24, 0.0 }
  0xff   : > { %v461_v35 = vmax.f32 %v407_v27, 0.0  ;;  %v469_v36 = vmax.f32 %v439_v28, 0.0 }
 0x100   : > { %v459_v39 = vmax.f32 %v399_v31, 0.0  ;;  %v467_v40 = vmax.f32 %v431_v32, 0.0 }
 0x101   : > { %v726_v41 = vpack.c.bf16 %v461_v35, %v460_v33  ;;  %v746_v42 = vpack.c.bf16 %v469_v36, %v468_v34 }
 0x102   : > { %v721_v43 = vpack.c.bf16 %v459_v39, %v458_v37  ;;  %v741_v44 = vpack.c.bf16 %v467_v40, %v466_v38  ;;  %v803_v45 = vpop.f32.mrb[4].mxu0  ;;  %v811_v46 = vpop.f32.mrb[4].mxu1 }
 0x103   : > { %758 = vst [vmem:[%s981_s17 + $0x8] sm:$0xff] %v726_v41   ;;  %762 = vst [vmem:[%s981_s17 + $0x28] sm:$0xff] %v746_v42   ;;  %v420_v47 = vadd.f32 %v803_v45, %v667_v16  ;;  %v452_v48 = vadd.f32 %v811_v46, %v667_v16  ;;  %v411_v49 = vpop.f32.mrb[5].mxu0  ;;  %v443_v50 = vpop.f32.mrb[5].mxu1 }
 0x104   : > { %722 = vst [vmem:[%s981_s17] sm:$0xff] %v721_v43   ;;  %761 = vst [vmem:[%s981_s17 + $0x20] sm:$0xff] %v741_v44   ;;  %v412_v51 = vadd.f32 %v667_v16, %v411_v49  ;;  %v444_v52 = vadd.f32 %v667_v16, %v443_v50  ;;  %v804_v53 = vpop.f32.mrb[6].mxu0  ;;  %v812_v54 = vpop.f32.mrb[6].mxu1 }
 0x105   : > { %v423_v55 = vadd.f32 %v804_v53, %v667_v16  ;;  %v455_v56 = vadd.f32 %v812_v54, %v667_v16  ;;  %v414_v57 = vpop.f32.mrb[7].mxu0  ;;  %v446_v58 = vpop.f32.mrb[7].mxu1  ;;  %v464_v61 = vmax.f32 %v420_v47, 0.0  ;;  %v472_v62 = vmax.f32 %v452_v48, 0.0 }
 0x106   : > { %v415_v59 = vadd.f32 %v667_v16, %v414_v57  ;;  %v447_v60 = vadd.f32 %v667_v16, %v446_v58  ;;  %v462_v1 = vmax.f32 %v412_v51, 0.0  ;;  %v470_v2 = vmax.f32 %v444_v52, 0.0 }
 0x107   : > { %v465_v63 = vmax.f32 %v423_v55, 0.0  ;;  %v473_v0 = vmax.f32 %v455_v56, 0.0 }
 0x108   : > { %v463_v3 = vmax.f32 %v415_v59, 0.0  ;;  %v471_v4 = vmax.f32 %v447_v60, 0.0 }
 0x109   : > { %v736_v5 = vpack.c.bf16 %v465_v63, %v464_v61  ;;  %v756_v6 = vpack.c.bf16 %v473_v0, %v472_v62 }
 0x10a   : > { %v731_v7 = vpack.c.bf16 %v463_v3, %v462_v1  ;;  %v751_v8 = vpack.c.bf16 %v471_v4, %v470_v2 }
 0x10b   : > { %760 = vst [vmem:[%s981_s17 + $0x18] sm:$0xff] %v736_v5   ;;  %764 = vst [vmem:[%s981_s17 + $0x38] sm:$0xff] %v756_v6  }
 0x10c   : > { %759 = vst [vmem:[%s981_s17 + $0x10] sm:$0xff] %v731_v7   ;;  %763 = vst [vmem:[%s981_s17 + $0x30] sm:$0xff] %v751_v8  }
 0x10d PF: > { %s13_s14 = sadd.s32 1, %s891_s14   ;;  %s1004_s12 = smov %s887_s13 }
 0x10e   : > { %p10_p5 = scmp.ge.s32.totalorder %s13_s14, 6   ;;  %s1005_s13 = smov %s1007_s15 }
 0x110   :  { %12 = sbr.rel (!%p10_p5) target bundleno = 2 (0x2), region = 68 }

// kernel: bottleneck_forward.4
= control target key start
LH: loop header
LB: loop body
LE: loop exit
PB: predicated region body
PF: predicated region fallthrough
CT: control target
= control target key end

     0   :  { %s3162_s12 = smov 0   ;;  %s3164_s13 = smov 0   ;;  %s3546_s0 = inlined_call_operand.vmem [shape: bf16[2,4,9,9,128], index: 0, kind: input, shape index: {}]   ;;  %s3547_s1 = inlined_call_operand.vmem [shape: bf16[9,128,128], index: 1, kind: input, shape index: {}]   ;;  %s3548_s2 = inlined_call_operand.vmem [shape: f32[1,128], index: 2, kind: input, shape index: {}]   ;;  %s3549_s3 = inlined_call_operand.vmem [shape: bf16[2,64,128], index: 3, kind: output, shape index: {}]  }
   0x1   :  { %s3166_s14 = smov 0  }
   0x2 LB: > { %s25_s15 = sadd.s32 1, %s3136_s13  ;;  %p2238_p0 = scmp.ge.s32.totalorder %s3140_s14, 1  ;;  %s3140_s14 = sphi %s3166_s14, %s13_s14   ;;  %s3136_s13 = sphi %s3164_s13, %s3553_s13   ;;  %s3132_s12 = sphi %s3162_s12, %s3552_s12  }
   0x3   : > { %p27_p1 = scmp.ge.s32.totalorder %s25_s15, 2  ;;  %p151_p2 = scmp.lt.s32.totalorder %s3140_s14, 3 }
   0x5   : > { %s3555_s15 = smov (%p27_p1, %s25_s15), 0  ;;  %p152_p3 = pnand %p2238_p0, %p151_p2 }
   0x6   : > { %v3022_v0 = vld [vmem:[%s3547_s1 + $0x40] sm:$0xff] (!%p152_p3)   ;;  %p179_p4 = scmp.lt.s32.totalorder (!%p152_p3), %s3132_s12, 1  ;;  %v3024_v2 = vld [vmem:[%s3547_s1 + $0x48] sm:$0xff] (!%p152_p3)   ;;  %v3026_v4 = vld [vmem:[%s3547_s1 + $0x50] sm:$0xff] (!%p152_p3)   ;;  %vm541_vm0 = vsmask.f32 (!%p152_p3), 3328 }
   0x7   : > { %155 = sbr.rel (%p152_p3) target bundleno = 392 (0x188), region = 32  ;;  %v3023_v1 = vld [vmem:[%s3547_s1 + $0x100] sm:$0xff] (!%p152_p3)   ;;  %2701 = vmatprep.subr.bf16.mxu1 (!%p152_p3), %v3022_v0  ;;  %v3025_v3 = vld [vmem:[%s3547_s1 + $0x108] sm:$0xff] (!%p152_p3)   ;;  %v3027_v5 = vld [vmem:[%s3547_s1 + $0x110] sm:$0xff] (!%p152_p3)   ;;  %vm542_vm1 = vsmask.f32 (!%p152_p3), 7440 }
   0x8   : > { %2797 = vmatprep.subr.bf16.mxu0 (!%p152_p3), %v3023_v1  ;;  %2702 = vmatpush3.bf16.msra.mxu1 (!%p152_p3), %v3022_v0  ;;  %v3028_v6 = vld [vmem:[%s3547_s1 + $0x58] sm:$0xff] (!%p152_p3)   ;;  %v3030_v8 = vld [vmem:[%s3547_s1 + $0x60] sm:$0xff] (!%p152_p3)   ;;  %v3032_v10 = vld [vmem:[%s3547_s1 + $0x68] sm:$0xff] (!%p152_p3)  }
   0x9   : > { %2798 = vmatpush3.bf16.msra.mxu0 (!%p152_p3), %v3023_v1  ;;  %2703 = vmatprep.subr.bf16.mxu1 (!%p152_p3), %v3024_v2  ;;  %v3029_v7 = vld [vmem:[%s3547_s1 + $0x118] sm:$0xff] (!%p152_p3)   ;;  %v3031_v9 = vld [vmem:[%s3547_s1 + $0x120] sm:$0xff] (!%p152_p3)   ;;  %v3033_v12 = vld [vmem:[%s3547_s1 + $0x128] sm:$0xff] (!%p152_p3)  }
   0xa   : > { %2799 = vmatprep.subr.bf16.mxu0 (!%p152_p3), %v3025_v3  ;;  %v3034_v14 = vld [vmem:[%s3547_s1 + $0x70] sm:$0xff] (!%p152_p3)   ;;  %v3036_v16 = vld [vmem:[%s3547_s1 + $0x78] sm:$0xff] (!%p152_p3)   ;;  %v3039_v18 = vld [vmem:[%s3547_s1] sm:$0xff] (!%p152_p3)  }
   0xb   : > { %v3035_v15 = vld [vmem:[%s3547_s1 + $0x130] sm:$0xff] (!%p152_p3)   ;;  %v3037_v17 = vld [vmem:[%s3547_s1 + $0x138] sm:$0xff] (!%p152_p3)   ;;  %v3041_v19 = vld [vmem:[%s3547_s1 + $0x140] sm:$0xff] (!%p152_p3)  }
   0xc   : > { %2704 = vmatpush3.bf16.msra.mxu1 (!%p152_p3), %v3024_v2  ;;  %v3044_v22 = vld [vmem:[%s3547_s1 + $0x8] sm:$0xff] (!%p152_p3)   ;;  %v3046_v26 = vld [vmem:[%s3547_s1 + $0x10] sm:$0xff] (!%p152_p3)   ;;  %v3048_v28 = vld [vmem:[%s3547_s1 + $0x18] sm:$0xff] (!%p152_p3)  }
   0xd   : > { %2800 = vmatpush3.bf16.msra.mxu0 (!%p152_p3), %v3025_v3  ;;  %2705 = vmatprep.subr.bf16.mxu1 (!%p152_p3), %v3026_v4  ;;  %v3045_v23 = vld [vmem:[%s3547_s1 + $0x148] sm:$0xff] (!%p152_p3)   ;;  %v3047_v27 = vld [vmem:[%s3547_s1 + $0x150] sm:$0xff] (!%p152_p3)   ;;  %v3049_v31 = vld [vmem:[%s3547_s1 + $0x158] sm:$0xff] (!%p152_p3)  }
   0xe   : > { %s3557_s12 = smov (!%p179_p4, %s3132_s12), 1  ;;  %2801 = vmatprep.subr.bf16.mxu0 %v3027_v5  ;;  %v3050_v38 = vld [vmem:[%s3547_s1 + $0x20] sm:$0xff]   ;;  %v3052_v47 = vld [vmem:[%s3547_s1 + $0x28] sm:$0xff]   ;;  %vm3287_vm2 = vmor %vm541_vm0, %vm542_vm1 }
   0xf   : > { %s2997_s5 = smul.u32 288, %s3557_s12  ;;  %v3051_v43 = vld [vmem:[%s3547_s1 + $0x160] sm:$0xff]   ;;  %v3053_v50 = vld [vmem:[%s3547_s1 + $0x168] sm:$0xff]   ;;  %v3055_v2 = vld [vmem:[%s3547_s1 + $0x30] sm:$0xff]  }
  0x10   : > { %2706 = vmatpush3.bf16.msra.mxu1 %v3026_v4 }
  0x11   : > { %2802 = vmatpush3.bf16.msra.mxu0 %v3027_v5  ;;  %2707 = vmatprep.subr.bf16.mxu1 %v3028_v6  ;;  %s3216_s16 = scalar_lea.vmem %s3546_s0, %s2997_s5  ;;  %s2561_s5 = sshll.u32 %s3557_s12, 5 }
  0x12   : > { %2803 = vmatprep.subr.bf16.mxu0 %v3029_v7  ;;  %v3038_v11 = vld [vmem:[%s3216_s16 + $0x48] ss:$8 sps:$4 sm:$0xff]   ;;  %v3040_v13 = vld [vmem:[%s3216_s16 + $0xd8] ss:$8 sps:$4 sm:$0xff]   ;;  %v2391_v34 = vld [vmem:[%s3216_s16 + $0x94] sm:$0x1]  ;;  %s192_s8 = scalar_lea.vmem %s3549_s3, %s2561_s5 }
  0x13   : > { %2717 = vmatprep.mubr.bf16.mxu1 %v3038_v11  ;;  %2813 = vmatprep.mubr.bf16.mxu0 %v3040_v13  ;;  %v3042_v20 = vld [vmem:[%s3216_s16 + $0x58] ss:$8 sps:$4 sm:$0xff]   ;;  %v3043_v21 = vld [vmem:[%s3216_s16 + $0xe8] ss:$8 sps:$4 sm:$0xff]   ;;  %v2393_v39 = vld [vmem:[%s3216_s16 + $0x9c] sm:$0x1] }
  0x14   : > { %2708 = vmatpush3.bf16.msra.mxu1 %v3028_v6  ;;  %v3054_v24 = vld [vmem:[%s3216_s16 + $0x68] ss:$8 sps:$4 sm:$0xff]   ;;  %v3056_v25 = vld [vmem:[%s3216_s16 + $0xf8] ss:$8 sps:$4 sm:$0xff]   ;;  %v1182_v40 = vshll.u32 %v2391_v34, 16  ;;  %v1196_v46 = vshll.u32 %v2393_v39, 16 }
  0x15   : > { %2804 = vmatpush3.bf16.msra.mxu0 %v3029_v7  ;;  %2709 = vmatprep.subr.bf16.mxu1 %v3030_v8  ;;  %v3058_v29 = vld [vmem:[%s3216_s16 + $0x78] ss:$8 sps:$4 sm:$0xff]   ;;  %v3059_v30 = vld [vmem:[%s3216_s16 + $0x108] ss:$8 sps:$4 sm:$0xff]   ;;  %v2395_v57 = vld [vmem:[%s3216_s16 + $0xa4] sm:$0x1] }
  0x16   : > { %2805 = vmatprep.subr.bf16.mxu0 %v3031_v9  ;;  %v3062_v32 = vld [vmem:[%s3216_s16] ss:$8 sps:$4 sm:$0xff]   ;;  %v2390_v33 = vld [vmem:[%s3216_s16 + $0x90] sm:$0xf]  ;;  %v2392_v35 = vld [vmem:[%s3216_s16 + $0x98] sm:$0xf] }
  0x17   : > { %v1173_v36 = vshrl.u32 %v2390_v33, 16  ;;  %v1176_v37 = vshll.u32 %v2390_v33, 16  ;;  %v1187_v41 = vshrl.u32 %v2392_v35, 16  ;;  %v1190_v42 = vshll.u32 %v2392_v35, 16  ;;  %v2394_v56 = vld [vmem:[%s3216_s16 + $0xa0] sm:$0xf] }
  0x18   : > { %2710 = vmatpush3.bf16.msra.mxu1 %v3030_v8  ;;  %v1184_v52 = vrot.slane %v1182_v40, 5  ;;  %v1198_v55 = vrot.slane %v1196_v46, 5  ;;  %v2396_v59 = vld [vmem:[%s3216_s16 + $0xa8] sm:$0xf]  ;;  %v2397_v60 = vld [vmem:[%s3216_s16 + $0xac] sm:$0x1] }
  0x19   : > { %2806 = vmatpush3.bf16.msra.mxu0 %v3031_v9  ;;  %2711 = vmatprep.subr.bf16.mxu1 %v3032_v10  ;;  %v1175_v44 = vrot.slane %v1173_v36, 4  ;;  %v1178_v45 = vrot.slane %v1176_v37, 5  ;;  %v1189_v48 = vrot.slane %v1187_v41, 4  ;;  %v1192_v49 = vrot.slane %v1190_v42, 5  ;;  %v3057_v6 = vld [vmem:[%s3547_s1 + $0x170] sm:$0xff]  }
  0x1a   : > { %2807 = vmatprep.subr.bf16.mxu0 %v3033_v12  ;;  %v1201_v61 = vshrl.u32 %v2394_v56, 16  ;;  %v1204_v63 = vshll.u32 %v2394_v56, 16  ;;  %v1210_v0 = vshll.u32 %v2395_v57, 16  ;;  %v1215_v1 = vshrl.u32 %v2396_v59, 16  ;;  %v3076_v37 = vld [vmem:[%s3216_s16 + $0x20] ss:$8 sps:$4 sm:$0xff]  }
  0x1b   : > { %v1179_v51 = vor.u32 %v1178_v45, %v1175_v44  ;;  %v1193_v54 = vor.u32 %v1192_v49, %v1189_v48  ;;  %v1218_v5 = vshll.u32 %v2396_v59, 16  ;;  %v3079_v48 = vld [vmem:[%s3216_s16 + $0x30] ss:$8 sps:$4 sm:$0xff]   ;;  %v2402_v49 = vld [vmem:[%s3216_s16 + $0xc0] sm:$0xf] }
  0x1c   : > { %2712 = vmatpush3.bf16.msra.mxu1 %v3032_v10  ;;  %v1203_v4 = vrot.slane %v1201_v61, 4  ;;  %v1206_v8 = vrot.slane %v1204_v63, 5  ;;  %v1217_v9 = vrot.slane %v1215_v1, 4  ;;  %v1224_v10 = vshll.u32 %v2397_v60, 16  ;;  %v3070_v59 = vld [vmem:[%s3547_s1 + $0x98] sm:$0xff]  }
  0x1d   : > { %2808 = vmatpush3.bf16.msra.mxu0 %v3033_v12  ;;  %2713 = vmatprep.subr.bf16.mxu1 %v3034_v14  ;;  %v1180_v58 = vrot.slane %v1179_v51, 4  ;;  %v1194_v62 = vrot.slane %v1193_v54, 4  ;;  %v1212_v12 = vrot.slane %v1210_v0, 5  ;;  %v1220_v13 = vrot.slane %v1218_v5, 5  ;;  %v2404_v51 = vld [vmem:[%s3216_s16 + $0xc8] sm:$0xf] }
  0x1e   : > { %2809 = vmatprep.subr.bf16.mxu0 %v3035_v15  ;;  %v1257_v56 = vshrl.u32 %v2402_v49, 16  ;;  %v1260_v57 = vshll.u32 %v2402_v49, 16  ;;  %v1271_v61 = vshrl.u32 %v2404_v51, 16 }
  0x1f   : > { %v1185_v3 = vsel %vm3287_vm2, %v1180_v58, %v1184_v52  ;;  %v1199_v7 = vsel %vm3287_vm2, %v1194_v62, %v1198_v55  ;;  %v3069_v52 = vld [vmem:[%s3547_s1 + $0x190] sm:$0xff]   ;;  %v2405_v55 = vld [vmem:[%s3216_s16 + $0xcc] sm:$0x1]  ;;  %v1274_v62 = vshll.u32 %v2404_v51, 16 }
  0x20   : > { %2714 = vmatpush3.bf16.msra.mxu1 %v3034_v14  ;;  %v2422_v11 = vcombine.low %v1185_v3, %v1199_v7  ;;  %v3060_v14 = vld [vmem:[%s3547_s1 + $0x38] sm:$0xff]   ;;  %v1280_v63 = vshll.u32 %v2405_v55, 16  ;;  %v1259_v1 = vrot.slane %v1257_v56, 4 }
  0x21   : > { %2810 = vmatpush3.bf16.msra.mxu0 %v3035_v15  ;;  %2715 = vmatprep.subr.bf16.mxu1 %v3036_v16  ;;  %v1207_v15 = vor.u32 %v1206_v8, %v1203_v4  ;;  %v3071_v4 = vld [vmem:[%s3547_s1 + $0x198] sm:$0xff]   ;;  %v1276_v7 = vrot.slane %v1274_v62, 5 }
  0x22   : > { %2811 = vmatprep.subr.bf16.mxu0 %v3037_v17  ;;  %v1282_v8 = vrot.slane %v1280_v63, 5 }
  0x24   : > { %2716 = vmatpush3.bf16.msra.mxu1 %v3036_v16  ;;  %v1221_v16 = vor.u32 %v1220_v13, %v1217_v9  ;;  %v3072_v13 = vld [vmem:[%s3547_s1 + $0xa0] sm:$0xff]  }
  0x25   : > { %2812 = vmatpush3.bf16.msra.mxu0 %v3037_v17  ;;  %2725 = vmatprep.subr.bf16.mxu1 %v3039_v18  ;;  %v1208_v17 = vrot.slane %v1207_v15, 4 }
  0x26   : > { %2821 = vmatprep.subr.bf16.mxu0 %v3041_v19 }
  0x27   : > { %2718 = vmatmul.mubr.bf16.vlgmr.msra.gmra.mrb[0].mxu1 %v3042_v20  ;;  %v1222_v20 = vrot.slane %v1221_v16, 4  ;;  %v527_v16 = vld [vmem:[%s3216_s16 + $0x8] sm:$0xf] }
  0x28   : > { %2726 = vmatpush3.bf16.msra.mxu1 %v3039_v18  ;;  %2814 = vmatmul.mubr.bf16.vlgmr.msra.gmra.mrb[0].mxu0 %v3043_v21  ;;  %v1226_v18 = vrot.slane %v1224_v10, 5  ;;  %v3063_v21 = vld [vmem:[%s3547_s1 + $0x80] sm:$0xff]  }
  0x29   : > { %2822 = vmatpush3.bf16.msra.mxu0 %v3041_v19  ;;  %2727 = vmatprep.subr.bf16.mxu1 %v3044_v22  ;;  %v3061_v19 = vld [vmem:[%s3547_s1 + $0x178] sm:$0xff]  }
  0x2a   : > { %2823 = vmatprep.subr.bf16.mxu0 %v3045_v23  ;;  %2721 = vmatprep.mubr.bf16.mxu1 %v3054_v24  ;;  %v3064_v24 = vld [vmem:[%s3547_s1 + $0x180] sm:$0xff]  }
  0x2b   : > { %2817 = vmatprep.mubr.bf16.mxu0 %v3056_v25  ;;  %v3065_v25 = vld [vmem:[%s3216_s16 + $0x10] ss:$8 sps:$4 sm:$0xff]  }
  0x2c   : > { %2728 = vmatpush3.bf16.msra.mxu1 %v3044_v22  ;;  %v1213_v22 = vsel %vm3287_vm2, %v1208_v17, %v1212_v12  ;;  %v526_v12 = vld [vmem:[%s3216_s16 + $0x4] sm:$0x1]  ;;  %v528_v17 = vld [vmem:[%s3216_s16 + $0xc] sm:$0x1] }
  0x2d   : > { %2824 = vmatpush3.bf16.msra.mxu0 %v3045_v23  ;;  %2729 = vmatprep.subr.bf16.mxu1 %v3046_v26  ;;  %v1227_v23 = vsel %vm3287_vm2, %v1222_v20, %v1226_v18 }
  0x2e   : > { %2825 = vmatprep.subr.bf16.mxu0 %v3047_v27 }
  0x2f   : > { %2722 = vmatmul.mubr.bf16.gmra.mrb[4].mxu1 %v3058_v29  ;;  %v3067_v29 = vld [vmem:[%s3547_s1 + $0x188] sm:$0xff]  }
  0x30   : > { %2730 = vmatpush3.bf16.msra.mxu1 %v3046_v26  ;;  %2818 = vmatmul.mubr.bf16.gmra.mrb[4].mxu0 %v3059_v30  ;;  %v3066_v26 = vld [vmem:[%s3547_s1 + $0x88] sm:$0xff]   ;;  %v2399_v30 = vld [vmem:[%s3216_s16 + $0xb4] sm:$0x1] }
  0x31   : > { %2826 = vmatpush3.bf16.msra.mxu0 %v3047_v27  ;;  %2731 = vmatprep.subr.bf16.mxu1 %v3048_v28  ;;  %v2398_v27 = vld [vmem:[%s3216_s16 + $0xb0] sm:$0xf]  ;;  %v1238_v35 = vshll.u32 %v2399_v30, 16 }
  0x32   : > { %2827 = vmatprep.subr.bf16.mxu0 %v3049_v31  ;;  %2741 = vmatprep.mubr.bf16.mxu1 %v3062_v32  ;;  %v2401_v32 = vld [vmem:[%s3216_s16 + $0xbc] sm:$0x1]  ;;  %v1229_v33 = vshrl.u32 %v2398_v27, 16  ;;  %v1232_v34 = vshll.u32 %v2398_v27, 16  ;;  %v568_v27 = vshll.u32 %v528_v17, 16 }
  0x33   : > { %2837 = vmatprep.mubr.bf16.mxu0 %v2422_v11  ;;  %v1252_v39 = vshll.u32 %v2401_v32, 16  ;;  %v1240_v44 = vrot.slane %v1238_v35, 5  ;;  %v525_v11 = vld [vmem:[%s3216_s16] sm:$0xf]  ;;  %v3074_v32 = vld [vmem:[%s3547_s1 + $0xa8] sm:$0xff]  }
  0x34   : > { %2732 = vmatpush3.bf16.msra.mxu1 %v3048_v28  ;;  %v2423_v28 = vcombine.low %v1213_v22, %v1227_v23  ;;  %v1231_v40 = vrot.slane %v1229_v33, 4  ;;  %v1234_v41 = vrot.slane %v1232_v34, 5  ;;  %v545_v18 = vshrl.u32 %v525_v11, 16  ;;  %v536_v17 = vld [vmem:[%s3216_s16 + $0x2c] sm:$0x1] }
  0x35   : > { %2828 = vmatpush3.bf16.msra.mxu0 %v3049_v31  ;;  %2733 = vmatprep.subr.bf16.mxu1 %v3050_v38  ;;  %v2400_v31 = vld [vmem:[%s3216_s16 + $0xb8] sm:$0xf]  ;;  %v1254_v46 = vrot.slane %v1252_v39, 5  ;;  %v559_v22 = vshrl.u32 %v527_v16, 16  ;;  %v562_v23 = vshll.u32 %v527_v16, 16 }
  0x36   : > { %2829 = vmatprep.subr.bf16.mxu0 %v3051_v43  ;;  %v1243_v36 = vshrl.u32 %v2400_v31, 16  ;;  %v535_v16 = vld [vmem:[%s3216_s16 + $0x28] sm:$0xf] }
  0x37   : > { %v561_v30 = vrot.slane %v559_v22, 4  ;;  %v615_v22 = vshrl.u32 %v535_v16, 16 }
  0x38   : > { %2734 = vmatpush3.bf16.msra.mxu1 %v3050_v38  ;;  %v1246_v38 = vshll.u32 %v2400_v31, 16  ;;  %v1245_v42 = vrot.slane %v1243_v36, 4  ;;  %v564_v31 = vrot.slane %v562_v23, 5  ;;  %v570_v36 = vrot.slane %v568_v27, 5 }
  0x39   : > { %2830 = vmatpush3.bf16.msra.mxu0 %v3051_v43  ;;  %2735 = vmatprep.subr.bf16.mxu1 %v3052_v47  ;;  %v3068_v43 = vld [vmem:[%s3547_s1 + $0x90] sm:$0xff]   ;;  %v618_v23 = vshll.u32 %v535_v16, 16  ;;  %v2507_v16 = vld [vmem:[%s3216_s16 + $0xc] sm:$0x1] }
  0x3a   : > { %2831 = vmatprep.subr.bf16.mxu0 %v3053_v50  ;;  %v1248_v45 = vrot.slane %v1246_v38, 5  ;;  %v3075_v38 = vld [vmem:[%s3547_s1 + $0x1a8] sm:$0xff]  }
  0x3c   : > { %2736 = vmatpush3.bf16.msra.mxu1 %v3052_v47  ;;  %v1235_v47 = vor.u32 %v1234_v41, %v1231_v40  ;;  %v1249_v54 = vor.u32 %v1248_v45, %v1245_v42  ;;  %v565_v40 = vor.u32 %v564_v31, %v561_v30  ;;  %v529_v41 = vld [vmem:[%s3216_s16 + $0x10] sm:$0xf]  ;;  %v620_v31 = vrot.slane %v618_v23, 5 }
  0x3d   : > { %2832 = vmatpush3.bf16.msra.mxu0 %v3053_v50  ;;  %2737 = vmatprep.subr.bf16.mxu1 %v3055_v2  ;;  %v2403_v50 = vld [vmem:[%s3216_s16 + $0xc4] sm:$0x1]  ;;  %v573_v45 = vshrl.u32 %v529_v41, 16  ;;  %v537_v30 = vld [vmem:[%s3216_s16 + $0x30] sm:$0xf] }
  0x3e   : > { %2833 = vmatprep.subr.bf16.mxu0 %v3057_v6  ;;  %v1266_v58 = vshll.u32 %v2403_v50, 16  ;;  %v1236_v60 = vrot.slane %v1235_v47, 4  ;;  %v1250_v0 = vrot.slane %v1249_v54, 4  ;;  %v532_v47 = vld [vmem:[%s3216_s16 + $0x1c] sm:$0x1] }
  0x40   : > { %2738 = vmatpush3.bf16.msra.mxu1 %v3055_v2  ;;  %v1262_v2 = vrot.slane %v1260_v57, 5  ;;  %v1268_v3 = vrot.slane %v1266_v58, 5  ;;  %v1241_v5 = vsel %vm3287_vm2, %v1236_v60, %v1240_v44  ;;  %v1255_v9 = vsel %vm3287_vm2, %v1250_v0, %v1254_v46  ;;  %v531_v44 = vld [vmem:[%s3216_s16 + $0x18] sm:$0xf]  ;;  %v3078_v60 = vld [vmem:[%s3547_s1 + $0x1b0] sm:$0xff]  }
  0x41   : > { %2834 = vmatpush3.bf16.msra.mxu0 %v3057_v6  ;;  %2739 = vmatprep.subr.bf16.mxu1 %v3060_v14  ;;  %v1273_v6 = vrot.slane %v1271_v61, 4  ;;  %v566_v46 = vrot.slane %v565_v40, 4  ;;  %v587_v50 = vshrl.u32 %v531_v44, 16  ;;  %v590_v54 = vshll.u32 %v531_v44, 16 }
  0x42   : > { %2835 = vmatprep.subr.bf16.mxu0 %v3061_v19  ;;  %v1263_v10 = vor.u32 %v1262_v2, %v1259_v1  ;;  %v596_v58 = vshll.u32 %v532_v47, 16 }
  0x43   : > { %v1277_v15 = vor.u32 %v1276_v7, %v1273_v6  ;;  %v571_v55 = vsel %vm3287_vm2, %v566_v46, %v570_v36  ;;  %v589_v57 = vrot.slane %v587_v50, 4  ;;  %v592_v63 = vrot.slane %v590_v54, 5  ;;  %v3081_v6 = vld [vmem:[%s3547_s1 + $0x1b8] sm:$0xff]   ;;  %v3082_v7 = vld [vmem:[%s3547_s1 + $0xc0] sm:$0xff]  }
  0x44   : > { %2740 = vmatpush3.bf16.msra.mxu1 %v3060_v14  ;;  %v2424_v14 = vcombine.low %v1241_v5, %v1255_v9  ;;  %v1264_v20 = vrot.slane %v1263_v10, 4  ;;  %v3084_v10 = vld [vmem:[%s3547_s1 + $0x1c0] sm:$0xff]   ;;  %v3090_v50 = vld [vmem:[%s3547_s1 + $0xd8] sm:$0xff]  }
  0x45   : > { %2836 = vmatpush3.bf16.msra.mxu0 %v3061_v19  ;;  %2749 = vmatprep.subr.bf16.mxu1 %v3063_v21  ;;  %v548_v19 = vshll.u32 %v525_v11, 16  ;;  %v593_v1 = vor.u32 %v592_v63, %v589_v57  ;;  %v3085_v11 = vld [vmem:[%s3216_s16 + $0x18] ss:$8 sps:$4 sm:$0xff]  }
  0x46   : > { %2845 = vmatprep.subr.bf16.mxu0 %v3064_v24 }
  0x47   : > { %2742 = vmatmul.mubr.bf16.vlgmr.msra.gmra.mrb[0].mxu1 %v3065_v25  ;;  %v547_v25 = vrot.slane %v545_v18, 4  ;;  %v594_v5 = vrot.slane %v593_v1, 4  ;;  %v3087_v18 = vld [vmem:[%s3547_s1 + $0x1c8] sm:$0xff]   ;;  %v3092_v1 = vld [vmem:[%s3547_s1 + $0xe0] sm:$0xff]  }
  0x48   : > { %2750 = vmatpush3.bf16.msra.mxu1 %v3063_v21  ;;  %2838 = vmatmul.mubr.bf16.vlgmr.msra.gmra.mrb[0].mxu0 %v2423_v28  ;;  %v554_v21 = vshll.u32 %v526_v12, 16  ;;  %v3073_v28 = vld [vmem:[%s3547_s1 + $0x1a0] sm:$0xff]  }
  0x49   : > { %2846 = vmatpush3.bf16.msra.mxu0 %v3064_v24  ;;  %2751 = vmatprep.subr.bf16.mxu1 %v3066_v26  ;;  %v1278_v24 = vrot.slane %v1277_v15, 4  ;;  %v533_v12 = vld [vmem:[%s3216_s16 + $0x20] sm:$0xf]  ;;  %v534_v15 = vld [vmem:[%s3216_s16 + $0x24] sm:$0x1] }
  0x4a   : > { %2847 = vmatprep.subr.bf16.mxu0 %v3067_v29  ;;  %2745 = vmatprep.mubr.bf16.mxu1 %v3076_v37  ;;  %v556_v35 = vrot.slane %v554_v21, 5  ;;  %v3083_v37 = vld [vmem:[%s3216_s16 + $0x8] ss:$8 sps:$4 sm:$0xff]   ;;  %v610_v21 = vshll.u32 %v534_v15, 16 }
  0x4b   : > { %2841 = vmatprep.mubr.bf16.mxu0 %v2424_v14  ;;  %v1283_v33 = vsel %vm3287_vm2, %v1278_v24, %v1282_v8  ;;  %v3086_v14 = vld [vmem:[%s3547_s1 + $0xc8] sm:$0xff]   ;;  %v624_v24 = vshll.u32 %v536_v17, 16  ;;  %v2508_v17 = vld [vmem:[%s3216_s16 + $0x10] sm:$0xf] }
  0x4c   : > { %2752 = vmatpush3.bf16.msra.mxu1 %v3066_v26  ;;  %v550_v26 = vrot.slane %v548_v19, 5  ;;  %v601_v19 = vshrl.u32 %v533_v12, 16  ;;  %v2506_v15 = vld [vmem:[%s3216_s16 + $0x8] sm:$0xf]  ;;  %v1819_v23 = vshll.u32 %v2508_v17, 16 }
  0x4d   : > { %2848 = vmatpush3.bf16.msra.mxu0 %v3067_v29  ;;  %2753 = vmatprep.subr.bf16.mxu1 %v3068_v43  ;;  %v1269_v29 = vsel %vm3287_vm2, %v1264_v20, %v1268_v3  ;;  %v598_v3 = vrot.slane %v596_v58, 5  ;;  %v604_v20 = vshll.u32 %v533_v12, 16  ;;  %v3098_v58 = vld [vmem:[%s3216_s16 + $0x38] ss:$8 sps:$4 sm:$0xff]  }
  0x4e   : > { %2849 = vmatprep.subr.bf16.mxu0 %v3069_v52  ;;  %v551_v34 = vor.u32 %v550_v26, %v547_v25  ;;  %v2425_v39 = vcombine.low %v1269_v29, %v1283_v33  ;;  %v3096_v25 = vld [vmem:[%s3216_s16 + $0x28] ss:$8 sps:$4 sm:$0xff]   ;;  %v603_v26 = vrot.slane %v601_v19, 4  ;;  %v617_v29 = vrot.slane %v615_v22, 4  ;;  %v538_v33 = vld [vmem:[%s3216_s16 + $0x34] sm:$0x1] }
  0x4f   : > { %2746 = vmatmul.mubr.bf16.gmra.mrb[4].mxu1 %v3079_v48  ;;  %v576_v48 = vshll.u32 %v529_v41, 16  ;;  %v599_v9 = vsel %vm3287_vm2, %v594_v5, %v598_v3  ;;  %v606_v27 = vrot.slane %v604_v20, 5  ;;  %v638_v40 = vshll.u32 %v538_v33, 16  ;;  %v3089_v41 = vld [vmem:[%s3547_s1 + $0x1d0] sm:$0xff]   ;;  %v3093_v5 = vld [vmem:[%s3547_s1 + $0x1e0] sm:$0xff]   ;;  %v3100_v12 = vld [vmem:[%s3547_s1 + $0xf8] sm:$0xff]  }
  0x50   : > { %2754 = vmatpush3.bf16.msra.mxu1 %v3068_v43  ;;  %v552_v42 = vrot.slane %v551_v34, 4  ;;  %v530_v43 = vld [vmem:[%s3216_s16 + $0x14] sm:$0x1]  ;;  %2842 = vmatmul.mubr.bf16.gmra.mrb[4].mxu0 %v2425_v39  ;;  %v539_v34 = vld [vmem:[%s3216_s16 + $0x38] sm:$0xf]  ;;  %v632_v39 = vshll.u32 %v537_v30, 16 }
  0x51   : > { %2850 = vmatpush3.bf16.msra.mxu0 %v3069_v52  ;;  %2755 = vmatprep.subr.bf16.mxu1 %v3070_v59  ;;  %v582_v49 = vshll.u32 %v530_v43, 16  ;;  %v575_v52 = vrot.slane %v573_v45, 4  ;;  %v578_v56 = vrot.slane %v576_v48, 5  ;;  %v607_v36 = vor.u32 %v606_v27, %v603_v26  ;;  %v2517_v33 = vld [vmem:[%s3216_s16 + $0x34] sm:$0x1] }
  0x52   : > { %2851 = vmatprep.subr.bf16.mxu0 %v3071_v4  ;;  %v557_v51 = vsel %vm3287_vm2, %v552_v42, %v556_v35  ;;  %2861 = vmatprep.mubr.bf16.mxu0 %v3083_v37  ;;  %v3088_v35 = vld [vmem:[%s3547_s1 + $0xd0] sm:$0xff]   ;;  %v540_v37 = vld [vmem:[%s3216_s16 + $0x3c] sm:$0x1]  ;;  %v621_v42 = vor.u32 %v620_v31, %v617_v29  ;;  %v643_v43 = vshrl.u32 %v539_v34, 16  ;;  %v646_v44 = vshll.u32 %v539_v34, 16 }
  0x53   : > { %v2306_v61 = vcombine.low %v557_v51, %v571_v55  ;;  %v584_v62 = vrot.slane %v582_v49, 5  ;;  %v579_v0 = vor.u32 %v578_v56, %v575_v52  ;;  %v652_v45 = vshll.u32 %v540_v37, 16  ;;  %v2516_v29 = vld [vmem:[%s3216_s16 + $0x30] sm:$0xf]  ;;  %v3105_v34 = vld [vmem:[%s3216_s16 + $0x60] ss:$8 sps:$4 sm:$0xff]  }
  0x54   : > { %2756 = vmatpush3.bf16.msra.mxu1 %v3070_v59  ;;  %v3077_v59 = vld [vmem:[%s3547_s1 + $0xb0] sm:$0xff]   ;;  %v608_v46 = vrot.slane %v607_v36, 4  ;;  %v634_v48 = vrot.slane %v632_v39, 5  ;;  %v640_v49 = vrot.slane %v638_v40, 5  ;;  %v622_v51 = vrot.slane %v621_v42, 4  ;;  %v3107_v39 = vld [vmem:[%s3547_s1 + $0x208] sm:$0xff]  }
  0x55   : > { %2852 = vmatpush3.bf16.msra.mxu0 %v3071_v4  ;;  %2757 = vmatprep.subr.bf16.mxu1 %v3072_v13  ;;  %v580_v2 = vrot.slane %v579_v0, 4  ;;  %v3080_v4 = vld [vmem:[%s3547_s1 + $0xb8] sm:$0xff]   ;;  %v645_v52 = vrot.slane %v643_v43, 4  ;;  %v648_v54 = vrot.slane %v646_v44, 5  ;;  %v654_v55 = vrot.slane %v652_v45, 5 }
  0x56   : > { %2853 = vmatprep.subr.bf16.mxu0 %v3073_v28  ;;  %2765 = vmatprep.mubr.bf16.mxu1 %v2306_v61  ;;  %v3091_v61 = vld [vmem:[%s3547_s1 + $0x1d8] sm:$0xff]   ;;  %v1802_v19 = vshrl.u32 %v2506_v15, 16  ;;  %v1805_v20 = vshll.u32 %v2506_v15, 16  ;;  %v1816_v22 = vshrl.u32 %v2508_v17, 16  ;;  %v1875_v42 = vshll.u32 %v2516_v29, 16  ;;  %v3114_v15 = vld [vmem:[%s3547_s1 + $0x220] sm:$0xff]  }
  0x57   : > { %v585_v8 = vsel %vm3287_vm2, %v580_v2, %v584_v62  ;;  %v1881_v43 = vshll.u32 %v2517_v33, 16  ;;  %v3108_v44 = vld [vmem:[%s3216_s16 + $0xb0] ss:$8 sps:$4 sm:$0xff]  }
  0x58   : > { %2758 = vmatpush3.bf16.msra.mxu1 %v3072_v13  ;;  %v2307_v13 = vcombine.low %v585_v8, %v599_v9  ;;  %v3094_v8 = vld [vmem:[%s3547_s1 + $0xe8] sm:$0xff]   ;;  %v1804_v26 = vrot.slane %v1802_v19, 4  ;;  %v1807_v27 = vrot.slane %v1805_v20, 5  ;;  %v1818_v31 = vrot.slane %v1816_v22, 4 }
  0x59   : > { %2854 = vmatpush3.bf16.msra.mxu0 %v3073_v28  ;;  %2759 = vmatprep.subr.bf16.mxu1 %v3074_v32  ;;  %v612_v28 = vrot.slane %v610_v21, 5  ;;  %v3095_v9 = vld [vmem:[%s3547_s1 + $0x1e8] sm:$0xff]   ;;  %v1811_v21 = vshll.u32 %v2507_v16, 16 }
  0x5a   : > { %2855 = vmatprep.subr.bf16.mxu0 %v3075_v38  ;;  %v3115_v20 = vld [vmem:[%s3547_s1 + $0x228] sm:$0xff]  }
  0x5b   : > { %v613_v56 = vsel %vm3287_vm2, %v608_v46, %v612_v28  ;;  %v2515_v28 = vld [vmem:[%s3216_s16 + $0x2c] sm:$0x1]  ;;  %v1813_v45 = vrot.slane %v1811_v21, 5  ;;  %v2519_v21 = vld [vmem:[%s3216_s16 + $0x3c] sm:$0x1] }
  0x5c   : > { %2760 = vmatpush3.bf16.msra.mxu1 %v3074_v32  ;;  %v626_v32 = vrot.slane %v624_v24, 5 }
  0x5d   : > { %2856 = vmatpush3.bf16.msra.mxu0 %v3075_v38  ;;  %2761 = vmatprep.subr.bf16.mxu1 %v3077_v59  ;;  %v629_v38 = vshrl.u32 %v537_v30, 16  ;;  %v3104_v30 = vld [vmem:[%s3216_s16 + $0xa0] ss:$8 sps:$4 sm:$0xff]  }
  0x5e   : > { %2857 = vmatprep.subr.bf16.mxu0 %v3078_v60 }
  0x5f   : > { %v631_v47 = vrot.slane %v629_v38, 4  ;;  %v1867_v38 = vshll.u32 %v2515_v28, 16 }
  0x60   : > { %2762 = vmatpush3.bf16.msra.mxu1 %v3077_v59  ;;  %v627_v59 = vsel %vm3287_vm2, %v622_v51, %v626_v32  ;;  %v1821_v32 = vrot.slane %v1819_v23, 5 }
  0x61   : > { %2858 = vmatpush3.bf16.msra.mxu0 %v3078_v60  ;;  %2763 = vmatprep.subr.bf16.mxu1 %v3080_v4  ;;  %v635_v57 = vor.u32 %v634_v48, %v631_v47  ;;  %v649_v60 = vor.u32 %v648_v54, %v645_v52  ;;  %v2308_v62 = vcombine.low %v613_v56, %v627_v59  ;;  %v1877_v54 = vrot.slane %v1875_v42, 5 }
  0x62   : > { %2859 = vmatprep.subr.bf16.mxu0 %v3081_v6  ;;  %v1822_v40 = vor.u32 %v1821_v32, %v1818_v31  ;;  %v1869_v56 = vrot.slane %v1867_v38, 5  ;;  %v1883_v59 = vrot.slane %v1881_v43, 5  ;;  %v2511_v31 = vld [vmem:[%s3216_s16 + $0x1c] sm:$0x1]  ;;  %v2513_v32 = vld [vmem:[%s3216_s16 + $0x24] sm:$0x1] }
  0x63   : > { %v636_v63 = vrot.slane %v635_v57, 4  ;;  %v650_v0 = vrot.slane %v649_v60, 4  ;;  %v3112_v57 = vld [vmem:[%s3547_s1 + $0x210] sm:$0xff]  }
  0x64   : > { %2764 = vmatpush3.bf16.msra.mxu1 %v3080_v4  ;;  %v3103_v4 = vld [vmem:[%s3216_s16 + $0x50] ss:$8 sps:$4 sm:$0xff]   ;;  %v1823_v51 = vrot.slane %v1822_v40, 4 }
  0x65   : > { %2860 = vmatpush3.bf16.msra.mxu0 %v3081_v6  ;;  %2773 = vmatprep.subr.bf16.mxu1 %v3082_v7  ;;  %v641_v2 = vsel %vm3287_vm2, %v636_v63, %v640_v49  ;;  %v655_v3 = vsel %vm3287_vm2, %v650_v0, %v654_v55  ;;  %v3109_v49 = vld [vmem:[%s3216_s16 + $0x70] ss:$8 sps:$4 sm:$0xff]  }
  0x66   : > { %2869 = vmatprep.subr.bf16.mxu0 %v3084_v10  ;;  %v2309_v6 = vcombine.low %v641_v2, %v655_v3  ;;  %v3113_v3 = vld [vmem:[%s3547_s1 + $0x218] sm:$0xff]  }
  0x67   : > { %2766 = vmatmul.mubr.bf16.vlgmr.msra.gmra.mrb[0].mxu1 %v2307_v13  ;;  %v3101_v13 = vld [vmem:[%s3547_s1 + $0x1f8] sm:$0xff]  }
  0x68   : > { %2774 = vmatpush3.bf16.msra.mxu1 %v3082_v7  ;;  %2862 = vmatmul.mubr.bf16.vlgmr.msra.gmra.mrb[0].mxu0 %v3085_v11  ;;  %v3102_v7 = vld [vmem:[%s3216_s16 + $0x90] ss:$8 sps:$4 sm:$0xff]  }
  0x69   : > { %2870 = vmatpush3.bf16.msra.mxu0 %v3084_v10  ;;  %2775 = vmatprep.subr.bf16.mxu1 %v3086_v14  ;;  %v3097_v10 = vld [vmem:[%s3547_s1 + $0xf0] sm:$0xff]  }
  0x6a   : > { %2871 = vmatprep.subr.bf16.mxu0 %v3087_v18  ;;  %2865 = vmatprep.mubr.bf16.mxu0 %v3096_v25  ;;  %v3099_v11 = vld [vmem:[%s3547_s1 + $0x1f0] sm:$0xff]   ;;  %v2514_v25 = vld [vmem:[%s3216_s16 + $0x28] sm:$0xf] }
  0x6b   : > { %2769 = vmatprep.mubr.bf16.mxu1 %v2308_v62  ;;  %v1858_v36 = vshrl.u32 %v2514_v25, 16  ;;  %v1861_v37 = vshll.u32 %v2514_v25, 16 }
  0x6c   : > { %2776 = vmatpush3.bf16.msra.mxu1 %v3086_v14  ;;  %v3106_v14 = vld [vmem:[%s3547_s1 + $0x200] sm:$0xff]  }
  0x6d   : > { %2872 = vmatpush3.bf16.msra.mxu0 %v3087_v18  ;;  %2777 = vmatprep.subr.bf16.mxu1 %v3088_v35  ;;  %v2509_v18 = vld [vmem:[%s3216_s16 + $0x14] sm:$0x1]  ;;  %v1860_v47 = vrot.slane %v1858_v36, 4  ;;  %v1863_v48 = vrot.slane %v1861_v37, 5 }
  0x6e   : > { %2873 = vmatprep.subr.bf16.mxu0 %v3089_v41  ;;  %v1825_v24 = vshll.u32 %v2509_v18, 16  ;;  %v3116_v37 = vld [vmem:[%s3547_s1 + $0x230] sm:$0xff]  }
  0x6f   : > { %2770 = vmatmul.mubr.bf16.gmra.mrb[4].mxu1 %v2309_v6  ;;  %v1864_v55 = vor.u32 %v1863_v48, %v1860_v47  ;;  %v2520_v6 = vld [vmem:[%s3216_s16 + $0x40] sm:$0xf] }
  0x70   : > { %2778 = vmatpush3.bf16.msra.mxu1 %v3088_v35  ;;  %2866 = vmatmul.mubr.bf16.gmra.mrb[4].mxu0 %v3098_v58  ;;  %v1808_v35 = vor.u32 %v1807_v27, %v1804_v26  ;;  %v1827_v46 = vrot.slane %v1825_v24, 5 }
  0x71   : > { %2874 = vmatpush3.bf16.msra.mxu0 %v3089_v41  ;;  %2779 = vmatprep.subr.bf16.mxu1 %v3090_v50  ;;  %v1872_v41 = vshrl.u32 %v2516_v29, 16  ;;  %v1865_v60 = vrot.slane %v1864_v55, 4 }
  0x72   : > { %2875 = vmatprep.subr.bf16.mxu0 %v3091_v61  ;;  %2885 = vmatprep.mubr.bf16.mxu0 %v3103_v4  ;;  %v1828_v63 = vsel %vm3287_vm2, %v1823_v51, %v1827_v46  ;;  %v3117_v46 = vld [vmem:[%s3547_s1 + $0x238] sm:$0xff]  }
  0x73   : > { %2789 = vmatprep.mubr.bf16.mxu1 %v3102_v7  ;;  %v1874_v52 = vrot.slane %v1872_v41, 4  ;;  %v1870_v2 = vsel %vm3287_vm2, %v1865_v60, %v1869_v56  ;;  %v1853_v41 = vshll.u32 %v2513_v32, 16 }
  0x74   : > { %2780 = vmatpush3.bf16.msra.mxu1 %v3090_v50  ;;  %v1809_v50 = vrot.slane %v1808_v35, 4 }
  0x75   : > { %2876 = vmatpush3.bf16.msra.mxu0 %v3091_v61  ;;  %2781 = vmatprep.subr.bf16.mxu1 %v3092_v1  ;;  %v1878_v58 = vor.u32 %v1877_v54, %v1874_v52  ;;  %v3110_v61 = vld [vmem:[%s3216_s16 + $0xc0] ss:$8 sps:$4 sm:$0xff]  }
  0x76   : > { %2877 = vmatprep.subr.bf16.mxu0 %v3093_v5  ;;  %v1814_v62 = vsel %vm3287_vm2, %v1809_v50, %v1813_v45  ;;  %v1855_v50 = vrot.slane %v1853_v41, 5 }
  0x77   : > { %v1879_v0 = vrot.slane %v1878_v58, 4  ;;  %v2538_v7 = vcombine.low %v1814_v62, %v1828_v63 }
  0x78   : > { %2782 = vmatpush3.bf16.msra.mxu1 %v3092_v1  ;;  %v3111_v1 = vld [vmem:[%s3216_s16 + $0x80] ss:$8 sps:$4 sm:$0xff]  }
  0x79   : > { %2878 = vmatpush3.bf16.msra.mxu0 %v3093_v5  ;;  %2783 = vmatprep.subr.bf16.mxu1 %v3094_v8  ;;  %v1884_v4 = vsel %vm3287_vm2, %v1879_v0, %v1883_v59  ;;  %v2518_v5 = vld [vmem:[%s3216_s16 + $0x38] sm:$0xf] }
  0x7a   : > { %2879 = vmatprep.subr.bf16.mxu0 %v3095_v9 }
  0x7c   : > { %2784 = vmatpush3.bf16.msra.mxu1 %v3094_v8  ;;  %v2510_v8 = vld [vmem:[%s3216_s16 + $0x18] sm:$0xf] }
  0x7d   : > { %2880 = vmatpush3.bf16.msra.mxu0 %v3095_v9  ;;  %2785 = vmatprep.subr.bf16.mxu1 %v3097_v10  ;;  %v2512_v9 = vld [vmem:[%s3216_s16 + $0x20] sm:$0xf]  ;;  %v1830_v16 = vshrl.u32 %v2510_v8, 16  ;;  %v1833_v17 = vshll.u32 %v2510_v8, 16 }
  0x7e   : > { %2881 = vmatprep.subr.bf16.mxu0 %v3099_v11  ;;  %v1844_v18 = vshrl.u32 %v2512_v9, 16  ;;  %v1847_v19 = vshll.u32 %v2512_v9, 16  ;;  %v2550_v9 = vld [vmem:[%s3548_s2] ss:$0 sm:$0xff] }
  0x7f   : > { %v1832_v26 = vrot.slane %v1830_v16, 4  ;;  %v1835_v27 = vrot.slane %v1833_v17, 5 }
  0x80   : > { %2786 = vmatpush3.bf16.msra.mxu1 %v3097_v10  ;;  %v2540_v10 = vcombine.low %v1870_v2, %v1884_v4  ;;  %v1846_v28 = vrot.slane %v1844_v18, 4  ;;  %v1849_v29 = vrot.slane %v1847_v19, 5 }
  0x81   : > { %2882 = vmatpush3.bf16.msra.mxu0 %v3099_v11  ;;  %2787 = vmatprep.subr.bf16.mxu1 %v3100_v12  ;;  %v1886_v11 = vshrl.u32 %v2518_v5, 16  ;;  %v1836_v38 = vor.u32 %v1835_v27, %v1832_v26 }
  0x82   : > { %2883 = vmatprep.subr.bf16.mxu0 %v3101_v13  ;;  %v1850_v40 = vor.u32 %v1849_v29, %v1846_v28 }
  0x83   : > { %v1888_v22 = vrot.slane %v1886_v11, 4  ;;  %v1837_v47 = vrot.slane %v1836_v38, 4 }
  0x84   : > { %2788 = vmatpush3.bf16.msra.mxu1 %v3100_v12  ;;  %v1889_v12 = vshll.u32 %v2518_v5, 16 }
  0x85   : > { %2884 = vmatpush3.bf16.msra.mxu0 %v3101_v13  ;;  %2917 = vmatprep.subr.bf16.mxu1 %v3106_v14  ;;  %v1900_v13 = vshrl.u32 %v2520_v6, 16 }
  0x86   : > { %2893 = vmatprep.subr.bf16.mxu0 %v3106_v14  ;;  %v1891_v23 = vrot.slane %v1889_v12, 5 }
  0x87   : > { %2790 = vmatmul.mubr.bf16.vlgmr.msra.gmra.mrb[0].mxu1 %v3104_v30  ;;  %v1902_v24 = vrot.slane %v1900_v13, 4  ;;  %v2521_v30 = vld [vmem:[%s3216_s16 + $0x44] sm:$0x1] }
  0x88   : > { %2886 = vmatmul.mubr.bf16.vlgmr.msra.gmra.mrb[0].mxu0 %v3105_v34  ;;  %2925 = vmatpush3.bf16.msra.mxu1 %v3106_v14  ;;  %v1892_v33 = vor.u32 %v1891_v23, %v1888_v22  ;;  %v1895_v34 = vshll.u32 %v2519_v21, 16  ;;  %v1909_v36 = vshll.u32 %v2521_v30, 16 }
  0x89   : > { %2894 = vmatpush3.bf16.msra.mxu0 %v3106_v14  ;;  %2918 = vmatprep.subr.bf16.mxu1 %v3107_v39  ;;  %v1903_v14 = vshll.u32 %v2520_v6, 16 }
  0x8a   : > { %2895 = vmatprep.subr.bf16.mxu0 %v3107_v39  ;;  %2793 = vmatprep.mubr.bf16.mxu1 %v3108_v44  ;;  %v1893_v42 = vrot.slane %v1892_v33, 4  ;;  %v1897_v43 = vrot.slane %v1895_v34, 5  ;;  %v1911_v45 = vrot.slane %v1909_v36, 5 }
  0x8b   : > { %2889 = vmatprep.mubr.bf16.mxu0 %v3109_v49  ;;  %v1905_v25 = vrot.slane %v1903_v14, 5  ;;  %v1851_v49 = vrot.slane %v1850_v40, 4 }
  0x8c   : > { %2926 = vmatpush3.bf16.msra.mxu1 %v3107_v39  ;;  %v1898_v51 = vsel %vm3287_vm2, %v1893_v42, %v1897_v43 }
  0x8d   : > { %2896 = vmatpush3.bf16.msra.mxu0 %v3107_v39  ;;  %2919 = vmatprep.subr.bf16.mxu1 %v3112_v57  ;;  %v1906_v35 = vor.u32 %v1905_v25, %v1902_v24  ;;  %v1839_v39 = vshll.u32 %v2511_v31, 16  ;;  %v1856_v55 = vsel %vm3287_vm2, %v1851_v49, %v1855_v50 }
  0x8e   : > { %2897 = vmatprep.subr.bf16.mxu0 %v3112_v57 }
  0x8f   : > { %2794 = vmatmul.mubr.bf16.gmra.mrb[4].mxu1 %v3110_v61  ;;  %v1907_v44 = vrot.slane %v1906_v35, 4  ;;  %v1841_v48 = vrot.slane %v1839_v39, 5 }
  0x90   : > { %2890 = vmatmul.mubr.bf16.gmra.mrb[4].mxu0 %v3111_v1  ;;  %2927 = vmatpush3.bf16.msra.mxu1 %v3112_v57 }
  0x91   : > { %2898 = vmatpush3.bf16.msra.mxu0 %v3112_v57  ;;  %2920 = vmatprep.subr.bf16.mxu1 %v3113_v3  ;;  %v1912_v52 = vsel %vm3287_vm2, %v1907_v44, %v1911_v45  ;;  %v1842_v54 = vsel %vm3287_vm2, %v1837_v47, %v1841_v48 }
  0x92   : > { %2899 = vmatprep.subr.bf16.mxu0 %v3113_v3  ;;  %2909 = vmatprep.mubr.bf16.mxu0 %v2538_v7  ;;  %v2541_v56 = vcombine.low %v1898_v51, %v1912_v52  ;;  %v2539_v57 = vcombine.low %v1842_v54, %v1856_v55 }
  0x93   : > { %2913 = vmatprep.mubr.bf16.mxu1 %v2540_v10 }
  0x94   : > { %2928 = vmatpush3.bf16.msra.mxu1 %v3113_v3 }
  0x95   : > { %2900 = vmatpush3.bf16.msra.mxu0 %v3113_v3  ;;  %2921 = vmatprep.subr.bf16.mxu1 %v3114_v15 }
  0x96   : > { %2901 = vmatprep.subr.bf16.mxu0 %v3114_v15 }
  0x98   : > { %2929 = vmatpush3.bf16.msra.mxu1 %v3114_v15 }
  0x99   : > { %2902 = vmatpush3.bf16.msra.mxu0 %v3114_v15  ;;  %2922 = vmatprep.subr.bf16.mxu1 %v3115_v20 }
  0x9a   : > { %2903 = vmatprep.subr.bf16.mxu0 %v3115_v20 }
  0x9c   : > { %2930 = vmatpush3.bf16.msra.mxu1 %v3115_v20 }
  0x9d   : > { %2904 = vmatpush3.bf16.msra.mxu0 %v3115_v20  ;;  %2923 = vmatprep.subr.bf16.mxu1 %v3116_v37 }
  0x9e   : > { %2905 = vmatprep.subr.bf16.mxu0 %v3116_v37 }
  0xa0   : > { %2931 = vmatpush3.bf16.msra.mxu1 %v3116_v37 }
  0xa1   : > { %2906 = vmatpush3.bf16.msra.mxu0 %v3116_v37  ;;  %2924 = vmatprep.subr.bf16.mxu1 %v3117_v46 }
  0xa2   : > { %2907 = vmatprep.subr.bf16.mxu0 %v3117_v46 }
  0xa4   : > { %2932 = vmatpush3.bf16.msra.mxu1 %v3117_v46 }
  0xa5   : > { %2908 = vmatpush3.bf16.msra.mxu0 %v3117_v46 }
  0xa7   : > { %2914 = vmatmul.mubr.bf16.vlgmr.msra.gmra.mrb[8].mxu1 %v2541_v56 }
  0xa8   : > { %2910 = vmatmul.mubr.bf16.vlgmr.msra.gmra.mrb[0].mxu0 %v2539_v57 }
 0x15a   : > { %v2791_v58 = vpop.f32.mrb[0].mxu1 }
 0x15b   : > { %v944_v59 = vpop.f32.mrb[1].mxu1 }
 0x15c   : > { %v2792_v60 = vpop.f32.mrb[2].mxu1 }
 0x15d   : > { %v947_v61 = vpop.f32.mrb[3].mxu1 }
 0x162   : > { %v2795_v62 = vpop.f32.mrb[4].mxu1 }
 0x163   : > { %v2891_v63 = vpop.f32.mrb[4].mxu0  ;;  %v960_v0 = vpop.f32.mrb[5].mxu1 }
 0x164   : > { %v2937_v1 = vadd.f32 %v2891_v63, %v2795_v62  ;;  %v1762_v2 = vpop.f32.mrb[5].mxu0  ;;  %v2796_v3 = vpop.f32.mrb[6].mxu1 }
 0x165   : > { %v2939_v4 = vadd.f32 %v1762_v2, %v960_v0  ;;  %v2892_v53 = vpop.f32.mrb[6].mxu0  ;;  %v963_v5 = vpop.f32.mrb[7].mxu1 }
 0x166   : > { %v2941_v6 = vadd.f32 %v2892_v53, %v2796_v3  ;;  %v1765_v7 = vpop.f32.mrb[7].mxu0 }
 0x167   : > { %v2943_v8 = vadd.f32 %v1765_v7, %v963_v5 }
 0x17a   : > { %v2915_v10 = vpop.f32.mrb[8].mxu1 }
 0x17b   : > { %v2911_v11 = vpop.f32.mrb[0].mxu0  ;;  %v2938_v12 = vadd.f32 %v2937_v1, %v2915_v10  ;;  %v2044_v13 = vpop.f32.mrb[9].mxu1 }
 0x17c   : > { %v2933_v14 = vadd.f32 %v2911_v11, %v2791_v58  ;;  %v2028_v15 = vpop.f32.mrb[1].mxu0  ;;  %v2940_v16 = vadd.f32 %v2939_v4, %v2044_v13  ;;  %v2916_v17 = vpop.f32.mrb[10].mxu1 }
 0x17d   : > { %v2080_v18 = vadd.f32 %v2938_v12, %v2550_v9  ;;  %v2934_v19 = vadd.f32 %v2028_v15, %v944_v59  ;;  %v2912_v20 = vpop.f32.mrb[2].mxu0  ;;  %v2942_v21 = vadd.f32 %v2941_v6, %v2916_v17  ;;  %v2047_v22 = vpop.f32.mrb[11].mxu1 }
 0x17e   : > { %v2076_v23 = vadd.f32 %v2933_v14, %v2550_v9  ;;  %v2078_v24 = vadd.f32 %v2940_v16, %v2550_v9  ;;  %v2935_v25 = vadd.f32 %v2912_v20, %v2792_v60  ;;  %v2031_v26 = vpop.f32.mrb[3].mxu0  ;;  %v2944_v27 = vadd.f32 %v2943_v8, %v2047_v22 }
 0x17f   : > { %v2074_v28 = vadd.f32 %v2934_v19, %v2550_v9  ;;  %v2081_v29 = vadd.f32 %v2942_v21, %v2550_v9  ;;  %v2936_v30 = vadd.f32 %v2031_v26, %v947_v61  ;;  %v2088_v33 = vmax.f32 %v2080_v18, 0.0 }
 0x180   : > { %v2077_v31 = vadd.f32 %v2935_v25, %v2550_v9  ;;  %v2079_v32 = vadd.f32 %v2944_v27, %v2550_v9  ;;  %v2084_v36 = vmax.f32 %v2076_v23, 0.0  ;;  %v2086_v37 = vmax.f32 %v2078_v24, 0.0 }
 0x181   : > { %v2089_v34 = vmax.f32 %v2081_v29, 0.0  ;;  %v2075_v35 = vadd.f32 %v2936_v30, %v2550_v9  ;;  %v2082_v40 = vmax.f32 %v2074_v28, 0.0 }
 0x182   : > { %v2085_v38 = vmax.f32 %v2077_v31, 0.0  ;;  %v2087_v39 = vmax.f32 %v2079_v32, 0.0 }
 0x183   : > { %v2588_v41 = vpack.c.bf16 %v2089_v34, %v2088_v33  ;;  %v2083_v42 = vmax.f32 %v2075_v35, 0.0 }
 0x184   : > { %v2578_v43 = vpack.c.bf16 %v2085_v38, %v2084_v36  ;;  %v2583_v44 = vpack.c.bf16 %v2087_v39, %v2086_v37 }
 0x185   : > { %2592 = vst [vmem:[%s192_s8 + $0x18] sm:$0xff] %v2588_v41   ;;  %v2573_v45 = vpack.c.bf16 %v2083_v42, %v2082_v40 }
 0x186   : > { %2590 = vst [vmem:[%s192_s8 + $0x8] sm:$0xff] %v2578_v43   ;;  %2591 = vst [vmem:[%s192_s8 + $0x10] sm:$0xff] %v2583_v44  }
 0x187   : > { %2574 = vst [vmem:[%s192_s8] sm:$0xff] %v2573_v45  }
 0x188 PF: > { %s13_s14 = sadd.s32 1, %s3140_s14   ;;  %s3552_s12 = smov %s3136_s13 }
 0x189   : > { %p10_p5 = scmp.ge.s32.totalorder %s13_s14, 4   ;;  %s3553_s13 = smov %s3555_s15 }
 0x18b   :  { %12 = sbr.rel (!%p10_p5) target bundleno = 2 (0x2), region = 76 }

// kernel: bottleneck_forward.5
= control target key start
LH: loop header
LB: loop body
LE: loop exit
PB: predicated region body
PF: predicated region fallthrough
CT: control target
= control target key end

     0   :  { %s1021_s3 = inlined_call_operand.vmem [shape: bf16[128,128], index: 3, kind: input, shape index: {}]   ;;  %s1022_s1 = inlined_call_operand.vmem [shape: bf16[128,128], index: 1, kind: input, shape index: {}]   ;;  %s1023_s2 = inlined_call_operand.vmem [shape: bf16[128,128], index: 2, kind: input, shape index: {}]   ;;  %s1024_s0 = inlined_call_operand.vmem [shape: bf16[128,128], index: 0, kind: input, shape index: {}]   ;;  %s1025_s4 = inlined_call_operand.vmem [shape: f32[1,128], index: 4, kind: input, shape index: {}]   ;;  %s1026_s5 = inlined_call_operand.vmem [shape: bf16[128,128], index: 5, kind: output, shape index: {}]  }
   0x1   :  { %v818_v0 = vld [vmem:[%s1021_s3] sm:$0xff]   ;;  %v820_v2 = vld [vmem:[%s1021_s3 + $0x8] sm:$0xff]   ;;  %v822_v4 = vld [vmem:[%s1021_s3 + $0x10] sm:$0xff]  }
   0x2   :  { %v819_v1 = vld [vmem:[%s1022_s1] sm:$0xff]   ;;  %738 = vmatprep.subr.bf16.mxu1 %v818_v0  ;;  %v821_v3 = vld [vmem:[%s1022_s1 + $0x8] sm:$0xff]   ;;  %v823_v5 = vld [vmem:[%s1022_s1 + $0x10] sm:$0xff]  }
   0x3   :  { %770 = vmatprep.subr.bf16.mxu0 %v819_v1  ;;  %739 = vmatpush3.bf16.msra.mxu1 %v818_v0  ;;  %v824_v6 = vld [vmem:[%s1021_s3 + $0x18] sm:$0xff]   ;;  %v826_v8 = vld [vmem:[%s1021_s3 + $0x20] sm:$0xff]   ;;  %v828_v10 = vld [vmem:[%s1021_s3 + $0x28] sm:$0xff]  }
   0x4   :  { %771 = vmatpush3.bf16.msra.mxu0 %v819_v1  ;;  %740 = vmatprep.subr.bf16.mxu1 %v820_v2  ;;  %v825_v7 = vld [vmem:[%s1022_s1 + $0x18] sm:$0xff]   ;;  %v827_v9 = vld [vmem:[%s1022_s1 + $0x20] sm:$0xff]   ;;  %v829_v11 = vld [vmem:[%s1022_s1 + $0x28] sm:$0xff]  }
   0x5   :  { %772 = vmatprep.subr.bf16.mxu0 %v821_v3  ;;  %v834_v12 = vld [vmem:[%s1023_s2] sm:$0xff]   ;;  %v830_v14 = vld [vmem:[%s1021_s3 + $0x30] sm:$0xff]   ;;  %v832_v16 = vld [vmem:[%s1021_s3 + $0x38] sm:$0xff]  }
   0x6   :  { %v835_v13 = vld [vmem:[%s1024_s0] sm:$0xff]   ;;  %754 = vmatprep.mubr.bf16.mxu1 %v834_v12  ;;  %v831_v15 = vld [vmem:[%s1022_s1 + $0x30] sm:$0xff]   ;;  %v833_v17 = vld [vmem:[%s1022_s1 + $0x38] sm:$0xff]  }
   0x7   :  { %741 = vmatpush3.bf16.msra.mxu1 %v820_v2  ;;  %786 = vmatprep.mubr.bf16.mxu0 %v835_v13  ;;  %v836_v18 = vld [vmem:[%s1023_s2 + $0x8] sm:$0xff]   ;;  %v838_v20 = vld [vmem:[%s1023_s2 + $0x10] sm:$0xff]   ;;  %v840_v22 = vld [vmem:[%s1023_s2 + $0x18] sm:$0xff]  }
   0x8   :  { %773 = vmatpush3.bf16.msra.mxu0 %v821_v3  ;;  %742 = vmatprep.subr.bf16.mxu1 %v822_v4  ;;  %v837_v19 = vld [vmem:[%s1024_s0 + $0x8] sm:$0xff]   ;;  %v839_v21 = vld [vmem:[%s1024_s0 + $0x10] sm:$0xff]   ;;  %v841_v23 = vld [vmem:[%s1024_s0 + $0x18] sm:$0xff]  }
   0x9   :  { %774 = vmatprep.subr.bf16.mxu0 %v823_v5  ;;  %v842_v24 = vld [vmem:[%s1023_s2 + $0x20] sm:$0xff]   ;;  %v844_v26 = vld [vmem:[%s1023_s2 + $0x28] sm:$0xff]   ;;  %v846_v28 = vld [vmem:[%s1023_s2 + $0x30] sm:$0xff]  }
   0xa   :  { %v843_v25 = vld [vmem:[%s1024_s0 + $0x20] sm:$0xff]   ;;  %v845_v27 = vld [vmem:[%s1024_s0 + $0x28] sm:$0xff]   ;;  %v847_v29 = vld [vmem:[%s1024_s0 + $0x30] sm:$0xff]  }
   0xb   :  { %743 = vmatpush3.bf16.msra.mxu1 %v822_v4  ;;  %v848_v30 = vld [vmem:[%s1023_s2 + $0x38] sm:$0xff]   ;;  %v979_v34 = vld [vmem:[%s1025_s4] ss:$0 sm:$0xff] }
   0xc   :  { %775 = vmatpush3.bf16.msra.mxu0 %v823_v5  ;;  %744 = vmatprep.subr.bf16.mxu1 %v824_v6  ;;  %v849_v31 = vld [vmem:[%s1024_s0 + $0x38] sm:$0xff]  }
   0xd   :  { %776 = vmatprep.subr.bf16.mxu0 %v825_v7 }
   0xf   :  { %745 = vmatpush3.bf16.msra.mxu1 %v824_v6 }
  0x10   :  { %777 = vmatpush3.bf16.msra.mxu0 %v825_v7  ;;  %746 = vmatprep.subr.bf16.mxu1 %v826_v8 }
  0x11   :  { %778 = vmatprep.subr.bf16.mxu0 %v827_v9 }
  0x13   :  { %747 = vmatpush3.bf16.msra.mxu1 %v826_v8 }
  0x14   :  { %779 = vmatpush3.bf16.msra.mxu0 %v827_v9  ;;  %748 = vmatprep.subr.bf16.mxu1 %v828_v10 }
  0x15   :  { %780 = vmatprep.subr.bf16.mxu0 %v829_v11 }
  0x17   :  { %749 = vmatpush3.bf16.msra.mxu1 %v828_v10 }
  0x18   :  { %781 = vmatpush3.bf16.msra.mxu0 %v829_v11  ;;  %750 = vmatprep.subr.bf16.mxu1 %v830_v14 }
  0x19   :  { %782 = vmatprep.subr.bf16.mxu0 %v831_v15 }
  0x1b   :  { %751 = vmatpush3.bf16.msra.mxu1 %v830_v14 }
  0x1c   :  { %783 = vmatpush3.bf16.msra.mxu0 %v831_v15  ;;  %752 = vmatprep.subr.bf16.mxu1 %v832_v16 }
  0x1d   :  { %784 = vmatprep.subr.bf16.mxu0 %v833_v17 }
  0x1f   :  { %753 = vmatpush3.bf16.msra.mxu1 %v832_v16 }
  0x20   :  { %785 = vmatpush3.bf16.msra.mxu0 %v833_v17 }
  0x22   :  { %755 = vmatmul.mubr.bf16.vlgmr.msra.gmra.mrb[0].mxu1 %v836_v18 }
  0x23   :  { %787 = vmatmul.mubr.bf16.vlgmr.msra.gmra.mrb[0].mxu0 %v837_v19  ;;  %758 = vmatprep.mubr.bf16.mxu1 %v838_v20 }
  0x24   :  { %790 = vmatprep.mubr.bf16.mxu0 %v839_v21 }
  0x2a   :  { %759 = vmatmul.mubr.bf16.gmra.mrb[4].mxu1 %v840_v22 }
  0x2b   :  { %791 = vmatmul.mubr.bf16.gmra.mrb[4].mxu0 %v841_v23  ;;  %762 = vmatprep.mubr.bf16.mxu1 %v842_v24 }
  0x2c   :  { %794 = vmatprep.mubr.bf16.mxu0 %v843_v25 }
  0x32   :  { %763 = vmatmul.mubr.bf16.gmra.mrb[8].mxu1 %v844_v26 }
  0x33   :  { %795 = vmatmul.mubr.bf16.gmra.mrb[8].mxu0 %v845_v27  ;;  %766 = vmatprep.mubr.bf16.mxu1 %v846_v28 }
  0x34   :  { %798 = vmatprep.mubr.bf16.mxu0 %v847_v29 }
  0x3a   :  { %767 = vmatmul.mubr.bf16.gmra.mrb[12].mxu1 %v848_v30 }
  0x3b   :  { %799 = vmatmul.mubr.bf16.gmra.mrb[12].mxu0 %v849_v31 }
  0xf5   :  { %v756_v32 = vpop.f32.mrb[0].mxu1 }
  0xf6   :  { %v788_v33 = vpop.f32.mrb[0].mxu0  ;;  %v215_v35 = vpop.f32.mrb[1].mxu1 }
  0xf7   :  { %v417_v36 = vadd.f32 %v788_v33, %v756_v32  ;;  %v408_v37 = vpop.f32.mrb[1].mxu0  ;;  %v757_v38 = vpop.f32.mrb[2].mxu1 }
  0xf8   :  { %v409_v39 = vadd.f32 %v408_v37, %v215_v35  ;;  %v789_v40 = vpop.f32.mrb[2].mxu0  ;;  %v218_v41 = vpop.f32.mrb[3].mxu1 }
  0xf9   :  { %v480_v42 = vadd.f32 %v979_v34, %v417_v36  ;;  %v420_v43 = vadd.f32 %v789_v40, %v757_v38  ;;  %v411_v44 = vpop.f32.mrb[3].mxu0 }
  0xfa   :  { %v478_v45 = vadd.f32 %v979_v34, %v409_v39  ;;  %v412_v46 = vadd.f32 %v411_v44, %v218_v41 }
  0xfb   :  { %v481_v47 = vadd.f32 %v979_v34, %v420_v43  ;;  %v496_v49 = vmax.f32 %v480_v42, 0.0 }
  0xfc   :  { %v479_v48 = vadd.f32 %v979_v34, %v412_v46  ;;  %v494_v52 = vmax.f32 %v478_v45, 0.0 }
  0xfd   :  { %v497_v50 = vmax.f32 %v481_v47, 0.0  ;;  %v760_v51 = vpop.f32.mrb[4].mxu1 }
  0xfe   :  { %v495_v53 = vmax.f32 %v479_v48, 0.0  ;;  %v792_v54 = vpop.f32.mrb[4].mxu0  ;;  %v231_v55 = vpop.f32.mrb[5].mxu1 }
  0xff   :  { %v667_v56 = vpack.c.bf16 %v497_v50, %v496_v49  ;;  %v433_v57 = vadd.f32 %v792_v54, %v760_v51  ;;  %v424_v58 = vpop.f32.mrb[5].mxu0  ;;  %v761_v59 = vpop.f32.mrb[6].mxu1 }
 0x100   :  { %v662_v60 = vpack.c.bf16 %v495_v53, %v494_v52  ;;  %v425_v61 = vadd.f32 %v424_v58, %v231_v55  ;;  %v793_v62 = vpop.f32.mrb[6].mxu0  ;;  %v234_v63 = vpop.f32.mrb[7].mxu1 }
 0x101   :  { %699 = vst [vmem:[%s1026_s5 + $0x8] sm:$0xff] %v667_v56   ;;  %v484_v0 = vadd.f32 %v979_v34, %v433_v57  ;;  %v436_v1 = vadd.f32 %v793_v62, %v761_v59  ;;  %v427_v2 = vpop.f32.mrb[7].mxu0 }
 0x102   :  { %663 = vst [vmem:[%s1026_s5] sm:$0xff] %v662_v60   ;;  %v482_v3 = vadd.f32 %v979_v34, %v425_v61  ;;  %v428_v4 = vadd.f32 %v427_v2, %v234_v63 }
 0x103   :  { %v485_v5 = vadd.f32 %v979_v34, %v436_v1  ;;  %v500_v7 = vmax.f32 %v484_v0, 0.0 }
 0x104   :  { %v483_v6 = vadd.f32 %v979_v34, %v428_v4  ;;  %v498_v10 = vmax.f32 %v482_v3, 0.0 }
 0x105   :  { %v501_v8 = vmax.f32 %v485_v5, 0.0  ;;  %v764_v9 = vpop.f32.mrb[8].mxu1 }
 0x106   :  { %v499_v11 = vmax.f32 %v483_v6, 0.0  ;;  %v796_v12 = vpop.f32.mrb[8].mxu0  ;;  %v247_v13 = vpop.f32.mrb[9].mxu1 }
 0x107   :  { %v677_v14 = vpack.c.bf16 %v501_v8, %v500_v7  ;;  %v449_v15 = vadd.f32 %v796_v12, %v764_v9  ;;  %v440_v16 = vpop.f32.mrb[9].mxu0  ;;  %v765_v17 = vpop.f32.mrb[10].mxu1 }
 0x108   :  { %v672_v18 = vpack.c.bf16 %v499_v11, %v498_v10  ;;  %v441_v19 = vadd.f32 %v440_v16, %v247_v13  ;;  %v797_v20 = vpop.f32.mrb[10].mxu0  ;;  %v250_v21 = vpop.f32.mrb[11].mxu1 }
 0x109   :  { %701 = vst [vmem:[%s1026_s5 + $0x18] sm:$0xff] %v677_v14   ;;  %v488_v22 = vadd.f32 %v979_v34, %v449_v15  ;;  %v452_v23 = vadd.f32 %v797_v20, %v765_v17  ;;  %v443_v24 = vpop.f32.mrb[11].mxu0 }
 0x10a   :  { %700 = vst [vmem:[%s1026_s5 + $0x10] sm:$0xff] %v672_v18   ;;  %v486_v25 = vadd.f32 %v979_v34, %v441_v19  ;;  %v444_v26 = vadd.f32 %v443_v24, %v250_v21 }
 0x10b   :  { %v489_v27 = vadd.f32 %v979_v34, %v452_v23  ;;  %v504_v29 = vmax.f32 %v488_v22, 0.0 }
 0x10c   :  { %v487_v28 = vadd.f32 %v979_v34, %v444_v26  ;;  %v502_v32 = vmax.f32 %v486_v25, 0.0 }
 0x10d   :  { %v505_v30 = vmax.f32 %v489_v27, 0.0  ;;  %v768_v31 = vpop.f32.mrb[12].mxu1 }
 0x10e   :  { %v503_v33 = vmax.f32 %v487_v28, 0.0  ;;  %v800_v35 = vpop.f32.mrb[12].mxu0  ;;  %v263_v36 = vpop.f32.mrb[13].mxu1 }
 0x10f   :  { %v687_v37 = vpack.c.bf16 %v505_v30, %v504_v29  ;;  %v465_v38 = vadd.f32 %v800_v35, %v768_v31  ;;  %v456_v39 = vpop.f32.mrb[13].mxu0  ;;  %v769_v40 = vpop.f32.mrb[14].mxu1 }
 0x110   :  { %v682_v41 = vpack.c.bf16 %v503_v33, %v502_v32  ;;  %v457_v42 = vadd.f32 %v456_v39, %v263_v36  ;;  %v801_v43 = vpop.f32.mrb[14].mxu0  ;;  %v266_v44 = vpop.f32.mrb[15].mxu1 }
 0x111   :  { %703 = vst [vmem:[%s1026_s5 + $0x28] sm:$0xff] %v687_v37   ;;  %v492_v45 = vadd.f32 %v979_v34, %v465_v38  ;;  %v468_v46 = vadd.f32 %v801_v43, %v769_v40  ;;  %v459_v47 = vpop.f32.mrb[15].mxu0 }
 0x112   :  { %702 = vst [vmem:[%s1026_s5 + $0x20] sm:$0xff] %v682_v41   ;;  %v490_v48 = vadd.f32 %v979_v34, %v457_v42  ;;  %v460_v49 = vadd.f32 %v459_v47, %v266_v44 }
 0x113   :  { %v493_v50 = vadd.f32 %v979_v34, %v468_v46  ;;  %v508_v52 = vmax.f32 %v492_v45, 0.0 }
 0x114   :  { %v491_v51 = vadd.f32 %v979_v34, %v460_v49  ;;  %v506_v54 = vmax.f32 %v490_v48, 0.0 }
 0x115   :  { %v509_v53 = vmax.f32 %v493_v50, 0.0 }
 0x116   :  { %v507_v55 = vmax.f32 %v491_v51, 0.0 }
 0x117   :  { %v697_v56 = vpack.c.bf16 %v509_v53, %v508_v52 }
 0x118   :  { %v692_v57 = vpack.c.bf16 %v507_v55, %v506_v54 }
 0x119   :  { %705 = vst [vmem:[%s1026_s5 + $0x38] sm:$0xff] %v697_v56  }
 0x11a   :  { %704 = vst [vmem:[%s1026_s5 + $0x30] sm:$0xff] %v692_v57  }

</bundles_post_ra>
